<compile_context>
chip_gen: v7x
topology: tpu7x:2x2x1
jax: 0.10.0
libtpu: 0.0.40
codegen_flags: <defaults>
</compile_context>

<pallas_src>
import functools

import jax
import jax.numpy as jnp
from jax.experimental import pallas as pl
from jax.experimental.pallas import tpu as pltpu

SMOOTHING = 0.001
EPSILON = 1e-8

_MIN_NORMAL_F32 = 1.1754943508222875e-38   # smallest normal float32
_SQRT_HALF = 0.70710678118654752440


def _vpu_log(x):
    """Natural log of positive *normal* f32 values using VPU-only ops.

    Cephes logf: IEEE exponent/mantissa split + degree-9 polynomial.
    Accuracy ~1 ulp. Keeps the per-element log off the single EUP slot
    (which still carries exp + log1p for softplus).
    """
    bits = pltpu.bitcast(x, jnp.int32)
    e = (bits >> 23) - 126                                   # frexp exponent
    m = pltpu.bitcast((bits & 0x007FFFFF) | 0x3F000000, jnp.float32)  # [0.5,1)
    small = m < _SQRT_HALF
    ef = jnp.where(small, e - 1, e).astype(jnp.float32)
    f = jnp.where(small, m + m, m) - 1.0
    z = f * f
    p = 7.0376836292e-2
    p = p * f - 1.1514610310e-1
    p = p * f + 1.1676998740e-1
    p = p * f - 1.2420140846e-1
    p = p * f + 1.4249322787e-1
    p = p * f - 1.6668057665e-1
    p = p * f + 2.0000714765e-1
    p = p * f - 2.4999993993e-1
    p = p * f + 3.3333331174e-1
    y = p * f * z
    y = y + ef * (-2.12194440e-4)
    y = y - 0.5 * z
    return (f + y) + ef * 0.693359375


def _label_smoothing_loss2_kernel(pred_ref, target_ref, loss_ref, acc_ref, *,
                                  smoothing, epsilon, n_classes, tc,
                                  has_class_pad):
    j = pl.program_id(1)
    last_j = pl.num_programs(1) - 1

    @pl.when(j == 0)
    def _init():
        acc_ref[...] = jnp.zeros_like(acc_ref)

    pred = pred_ref[...].astype(jnp.float32)               # (TB, TC)
    tgt = target_ref[...]                                   # (TB, 1) int32

    def accumulate(mask_tail):
        # Numerically stable softplus: max(x, 0) + log1p(exp(-|x|)).
        # exp + log1p are the only EUP ops per element.
        sp = jnp.maximum(pred, 0.0) + jnp.log1p(jnp.exp(-jnp.abs(pred)))
        # Per-element log on the VPU; exact-zero softplus maps to -inf to
        # match log(0) in the reference.
        log_sp = jnp.where(sp > 0.0,
                           _vpu_log(jnp.maximum(sp, _MIN_NORMAL_F32)),
                           -jnp.inf)
        local = jax.lax.broadcasted_iota(jnp.int32, pred.shape, 1)
        # One-hot gather via local iota; padded columns can never match a
        # valid target index, so it needs no extra mask.
        onehot = local == (tgt - j * tc)
        if mask_tail:
            valid = local < (n_classes - j * tc)
            sp_s = jnp.sum(jnp.where(valid, sp, 0.0), axis=-1, keepdims=True)
            log_s = jnp.sum(jnp.where(valid, log_sp, 0.0), axis=-1,
                            keepdims=True)
        else:
            sp_s = jnp.sum(sp, axis=-1, keepdims=True)
            log_s = jnp.sum(log_sp, axis=-1, keepdims=True)
        sp_y = jnp.sum(jnp.where(onehot, sp, 0.0), axis=-1, keepdims=True)
        # Packed accumulators: lane 0 = sum(sp), lane 1 = sp[target],
        # lane 2 = sum(log(sp)).
        acc_ref[:, 0:1] += sp_s
        acc_ref[:, 1:2] += sp_y
        acc_ref[:, 2:3] += log_s

    if has_class_pad:
        @pl.when(j != last_j)
        def _steady():
            accumulate(mask_tail=False)

        @pl.when(j == last_j)
        def _tail():
            accumulate(mask_tail=True)
    else:
        accumulate(mask_tail=False)

    @pl.when(j == last_j)
    def _finalize():
        nc = float(n_classes)
        sp_sum = acc_ref[:, 0:1] + epsilon                   # (TB, 1)
        sp_y = acc_ref[:, 1:2] + epsilon                     # (TB, 1)
        sum_log_sp = acc_ref[:, 2:3]                         # (TB, 1)
        log_sp_sum = jnp.log(sp_sum)                         # tiny: (TB,1)
        nll = -(jnp.log(sp_y) - log_sp_sum)
        smooth = -(sum_log_sp - nc * log_sp_sum) / nc
        loss = (1.0 - smoothing) * nll + smoothing * smooth
        loss_ref[...] = loss.astype(loss_ref.dtype)


def _round_up(x, m):
    return (x + m - 1) // m * m


def _vmem_capacity_bytes():
    try:
        return int(pltpu.get_tpu_info().vmem_capacity_bytes)
    except Exception:
        return 64 * 1024 * 1024        # conservative (v7x per-TensorCore)


def label_smoothing_loss2(pred, target, *, smoothing=SMOOTHING,
                          epsilon=EPSILON, class_tile=None):
    """pred: (B, C) float, target: (B,) int -> loss: (B,) float32."""
    B, C = pred.shape
    itemsize = jnp.dtype(pred.dtype).itemsize

    # VMEM budget: use ~3/4 of physical VMEM (v5e/v6e 128 MiB -> 96 MiB,
    # v7x 64 MiB -> 48 MiB, leaving headroom for Mosaic internals). Size the
    # pred block so 2x double-buffered input (input dtype) plus up to three
    # full-block f32 intermediates (cast / sp / log_sp) plus ~6 MiB of
    # scratch/headroom still fit.
    vmem_cap = _vmem_capacity_bytes()
    vmem_limit = (vmem_cap * 3) // 4
    budget_elems = max(128 * 128,
                       (vmem_limit - (6 << 20)) // (2 * itemsize + 12))

    # Batch tile: multiple of 128; force >= 2 batch tiles when B >= 256 so
    # the "parallel" batch axis shards across both v7x TensorCores.
    B128 = _round_up(B, 128)
    if B128 >= 256:
        TB = min(512, _round_up(-(-B128 // 2), 128))
    else:
        TB = B128

    # Class tile: multiple of 128, capped by the VMEM budget; prefer a tile
    # that divides C so the steady-state path needs no padding mask at all.
    C128 = _round_up(C, 128)
    max_tc = max(128, (budget_elems // TB) // 128 * 128)
    if class_tile is not None:
        TC = max(128, min(_round_up(class_tile, 128), C128, max_tc))
    else:
        TC = min(C128, max_tc)
        if C % 128 == 0 and C % TC != 0:
            for cand in range(TC, max(128, TC // 2) - 1, -128):
                if C % cand == 0:
                    TC = cand
                    break

    Bp = _round_up(B, TB)
    Cp = _round_up(C, TC)
    has_class_pad = Cp != C

    pred_p = pred
    if (Bp, Cp) != (B, C):
        pred_p = jnp.pad(pred, ((0, Bp - B), (0, Cp - C)))
    target_col = target.astype(jnp.int32).reshape(B, 1)
    if Bp != B:
        target_col = jnp.pad(target_col, ((0, Bp - B), (0, 0)))

    num_b = Bp // TB
    num_c = Cp // TC

    kernel = functools.partial(_label_smoothing_loss2_kernel,
                               smoothing=float(smoothing),
                               epsilon=float(epsilon),
                               n_classes=C, tc=TC,
                               has_class_pad=has_class_pad)

    loss_col = pl.pallas_call(
        kernel,
        out_shape=jax.ShapeDtypeStruct((Bp, 1), jnp.float32),
        grid=(num_b, num_c),
        in_specs=[
            pl.BlockSpec((TB, TC), lambda i, j: (i, j)),   # pred tile
            pl.BlockSpec((TB, 1), lambda i, j: (i, 0)),    # target column
        ],
        out_specs=pl.BlockSpec((TB, 1), lambda i, j: (i, 0)),  # loss column
        scratch_shapes=[pltpu.VMEM((TB, 128), jnp.float32)],   # packed accs
        compiler_params=pltpu.CompilerParams(
            dimension_semantics=("parallel", "arbitrary"),
            vmem_limit_bytes=int(vmem_limit)),
    )(pred_p, target_col)

    return loss_col.reshape(Bp)[:B]


def _reference(pred, target, smoothing=SMOOTHING, epsilon=EPSILON):
    sp = jax.nn.softplus(pred.astype(jnp.float32))
    C = pred.shape[-1]
    sp_sum = jnp.sum(sp, axis=-1) + epsilon
    sp_y = jnp.take_along_axis(sp, target[:, None], axis=-1)[:, 0] + epsilon
    nll = -(jnp.log(sp_y) - jnp.log(sp_sum))
    sum_log_sp = jnp.sum(jnp.log(sp), axis=-1)
    sum_log_prob = sum_log_sp - C * jnp.log(sp_sum)
    smooth = -sum_log_prob / C
    return (1.0 - smoothing) * nll + smoothing * smooth


if __name__ == "__main__":
    key = jax.random.PRNGKey(0)
    cases = [
        dict(B=8, C=32, class_tile=None),     # single masked class tile
        dict(B=200, C=384, class_tile=128),   # 2 batch tiles, 3 unmasked tiles
        dict(B=64, C=200, class_tile=128),    # unmasked tile + masked tail
    ]
    for idx, case in enumerate(cases):
        kp, kt, key = jax.random.split(key, 3)
        pred = jax.random.normal(kp, (case["B"], case["C"]),
                                 dtype=jnp.float32) * 2.0
        target = jax.random.randint(kt, (case["B"],), 0, case["C"],
                                    dtype=jnp.int32)
        loss = label_smoothing_loss2(pred, target,
                                     class_tile=case["class_tile"])
        jax.block_until_ready(loss)
        ref = _reference(pred, target)
        assert loss.shape == (case["B"],)
        assert jnp.allclose(loss, ref, atol=1e-5, rtol=1e-5), (idx, loss, ref)

    print("KERNEL_OK")
</pallas_src>

<mosaic_0001>
module attributes {stable_mosaic.version = 11 : i64} {
  func.func @_label_smoothing_loss2_kernel(%arg0: i32, %arg1: i32, %arg2: memref<128x128xf32, #tpu.memory_space<vmem>>, %arg3: memref<128x1xi32, #tpu.memory_space<vmem>>, %arg4: memref<128x1xf32, #tpu.memory_space<vmem>>, %arg5: memref<128x128xf32, #tpu.memory_space<vmem>>) attributes {dimension_semantics = [#tpu.dimension_semantics<parallel>, #tpu.dimension_semantics<arbitrary>], iteration_bounds = array<i64: 1, 1>, scalar_prefetch = 0 : i64, scratch_operands = 1 : i64, tpu.core_type = #tpu.core_type<tc>, window_params = [{transform_indices = @transform_0, window_bounds = array<i64: 128, 128>}, {transform_indices = @transform_1, window_bounds = array<i64: 128, 1>}, {transform_indices = @transform_2, window_bounds = array<i64: 128, 1>}]} {
    %c0_i32 = arith.constant 0 : i32
    %0 = arith.cmpi eq, %arg1, %c0_i32 : i32
    %1 = arith.extui %0 : i1 to i32
    %c0_i32_0 = arith.constant 0 : i32
    %2 = arith.cmpi ne, %1, %c0_i32_0 : i32
    scf.if %2 {
      %cst = arith.constant 0.000000e+00 : f32
      %14 = vector.broadcast %cst : f32 to vector<128x128xf32>
      %c0_10 = arith.constant 0 : index
      %c0_11 = arith.constant 0 : index
      %15 = vector.load %arg5[%c0_10, %c0_11] : memref<128x128xf32, #tpu.memory_space<vmem>>, vector<128x128xf32>
      tpu.vector_store %arg5[%c0_10, %c0_11], %14 {strides = array<i32>} : memref<128x128xf32, #tpu.memory_space<vmem>>, vector<128x128xf32>,
    } else {
    }
    %c0 = arith.constant 0 : index
    %c0_1 = arith.constant 0 : index
    %3 = vector.load %arg2[%c0, %c0_1] : memref<128x128xf32, #tpu.memory_space<vmem>>, vector<128x128xf32>
    %c0_2 = arith.constant 0 : index
    %c0_3 = arith.constant 0 : index
    %4 = vector.load %arg3[%c0_2, %c0_3] : memref<128x1xi32, #tpu.memory_space<vmem>>, vector<128x1xi32>
    %c0_i32_4 = arith.constant 0 : i32
    %5 = arith.cmpi ne, %arg1, %c0_i32_4 : i32
    %6 = arith.extui %5 : i1 to i32
    %c0_i32_5 = arith.constant 0 : i32
    %7 = arith.cmpi ne, %6, %c0_i32_5 : i32
    scf.if %7 {
      %cst = arith.constant 0.000000e+00 : f32
      %14 = vector.broadcast %cst : f32 to vector<128x128xf32>
      %15 = arith.maximumf %3, %14 : vector<128x128xf32>
      %16 = math.absf %3 : vector<128x128xf32>
      %cst_10 = arith.constant 0.000000e+00 : f32
      %17 = vector.broadcast %cst_10 : f32 to vector<128x128xf32>
      %18 = arith.subf %17, %16 : vector<128x128xf32>
      %19 = math.exp %18 : vector<128x128xf32>
      %20 = math.log1p %19 : vector<128x128xf32>
      %21 = arith.addf %15, %20 : vector<128x128xf32>
      %cst_11 = arith.constant 0.000000e+00 : f32
      %22 = vector.broadcast %cst_11 : f32 to vector<128x128xf32>
      %23 = arith.cmpf ogt, %21, %22 : vector<128x128xf32>
      %cst_12 = arith.constant 1.17549435E-38 : f32
      %24 = vector.broadcast %cst_12 : f32 to vector<128x128xf32>
      %25 = arith.maximumf %21, %24 : vector<128x128xf32>
      %26 = tpu.bitcast %25 : vector<128x128xf32> -> vector<128x128xi32>
      %c23_i32 = arith.constant 23 : i32
      %27 = vector.broadcast %c23_i32 : i32 to vector<128x128xi32>
      %28 = arith.shrsi %26, %27 : vector<128x128xi32>
      %c126_i32 = arith.constant 126 : i32
      %29 = vector.broadcast %c126_i32 : i32 to vector<128x128xi32>
      %30 = arith.subi %28, %29 : vector<128x128xi32>
      %c8388607_i32 = arith.constant 8388607 : i32
      %31 = vector.broadcast %c8388607_i32 : i32 to vector<128x128xi32>
      %32 = arith.andi %26, %31 : vector<128x128xi32>
      %c1056964608_i32 = arith.constant 1056964608 : i32
      %33 = vector.broadcast %c1056964608_i32 : i32 to vector<128x128xi32>
      %34 = arith.ori %32, %33 : vector<128x128xi32>
      %35 = tpu.bitcast %34 : vector<128x128xi32> -> vector<128x128xf32>
      %cst_13 = arith.constant 0.707106769 : f32
      %36 = vector.broadcast %cst_13 : f32 to vector<128x128xf32>
      %37 = arith.cmpf olt, %35, %36 : vector<128x128xf32>
      %c1_i32 = arith.constant 1 : i32
      %38 = vector.broadcast %c1_i32 : i32 to vector<128x128xi32>
      %39 = arith.subi %30, %38 : vector<128x128xi32>
      %40 = arith.select %37, %39, %30 : vector<128x128xi1>, vector<128x128xi32>
      %41 = arith.sitofp %40 : vector<128x128xi32> to vector<128x128xf32>
      %42 = arith.addf %35, %35 : vector<128x128xf32>
      %43 = arith.select %37, %42, %35 : vector<128x128xi1>, vector<128x128xf32>
      %cst_14 = arith.constant 1.000000e+00 : f32
      %44 = vector.broadcast %cst_14 : f32 to vector<128x128xf32>
      %45 = arith.subf %43, %44 : vector<128x128xf32>
      %46 = arith.mulf %45, %45 : vector<128x128xf32>
      %cst_15 = arith.constant 0.0703768358 : f32
      %47 = vector.broadcast %cst_15 : f32 to vector<128x128xf32>
      %48 = arith.mulf %47, %45 : vector<128x128xf32>
      %cst_16 = arith.constant 0.115146101 : f32
      %49 = vector.broadcast %cst_16 : f32 to vector<128x128xf32>
      %50 = arith.subf %48, %49 : vector<128x128xf32>
      %51 = arith.mulf %50, %45 : vector<128x128xf32>
      %cst_17 = arith.constant 0.116769984 : f32
      %52 = vector.broadcast %cst_17 : f32 to vector<128x128xf32>
      %53 = arith.addf %51, %52 : vector<128x128xf32>
      %54 = arith.mulf %53, %45 : vector<128x128xf32>
      %cst_18 = arith.constant 0.12420141 : f32
      %55 = vector.broadcast %cst_18 : f32 to vector<128x128xf32>
      %56 = arith.subf %54, %55 : vector<128x128xf32>
      %57 = arith.mulf %56, %45 : vector<128x128xf32>
      %cst_19 = arith.constant 0.142493233 : f32
      %58 = vector.broadcast %cst_19 : f32 to vector<128x128xf32>
      %59 = arith.addf %57, %58 : vector<128x128xf32>
      %60 = arith.mulf %59, %45 : vector<128x128xf32>
      %cst_20 = arith.constant 0.166680574 : f32
      %61 = vector.broadcast %cst_20 : f32 to vector<128x128xf32>
      %62 = arith.subf %60, %61 : vector<128x128xf32>
      %63 = arith.mulf %62, %45 : vector<128x128xf32>
      %cst_21 = arith.constant 0.200007141 : f32
      %64 = vector.broadcast %cst_21 : f32 to vector<128x128xf32>
      %65 = arith.addf %63, %64 : vector<128x128xf32>
      %66 = arith.mulf %65, %45 : vector<128x128xf32>
      %cst_22 = arith.constant 0.24999994 : f32
      %67 = vector.broadcast %cst_22 : f32 to vector<128x128xf32>
      %68 = arith.subf %66, %67 : vector<128x128xf32>
      %69 = arith.mulf %68, %45 : vector<128x128xf32>
      %cst_23 = arith.constant 0.333333313 : f32
      %70 = vector.broadcast %cst_23 : f32 to vector<128x128xf32>
      %71 = arith.addf %69, %70 : vector<128x128xf32>
      %72 = arith.mulf %71, %45 : vector<128x128xf32>
      %73 = arith.mulf %72, %46 : vector<128x128xf32>
      %cst_24 = arith.constant -2.12194442E-4 : f32
      %74 = vector.broadcast %cst_24 : f32 to vector<128x128xf32>
      %75 = arith.mulf %41, %74 : vector<128x128xf32>
      %76 = arith.addf %73, %75 : vector<128x128xf32>
      %cst_25 = arith.constant 5.000000e-01 : f32
      %77 = vector.broadcast %cst_25 : f32 to vector<128x128xf32>
      %78 = arith.mulf %77, %46 : vector<128x128xf32>
      %79 = arith.subf %76, %78 : vector<128x128xf32>
      %80 = arith.addf %45, %79 : vector<128x128xf32>
      %cst_26 = arith.constant 0.693359375 : f32
      %81 = vector.broadcast %cst_26 : f32 to vector<128x128xf32>
      %82 = arith.mulf %41, %81 : vector<128x128xf32>
      %83 = arith.addf %80, %82 : vector<128x128xf32>
      %cst_27 = arith.constant 0xFF800000 : f32
      %84 = vector.broadcast %cst_27 : f32 to vector<128x128xf32>
      %85 = arith.select %23, %83, %84 : vector<128x128xi1>, vector<128x128xf32>
      %86 = tpu.iota {dimensions = array<i32: 1>} : vector<128x128xi32>
      %c128_i32 = arith.constant 128 : i32
      %87 = arith.muli %arg1, %c128_i32 : i32
      %88 = vector.broadcast %87 : i32 to vector<128x1xi32>
      %89 = arith.subi %4, %88 : vector<128x1xi32>
      %90 = vector.broadcast %89 : vector<128x1xi32> to vector<128x128xi32>
      %91 = arith.cmpi eq, %86, %90 : vector<128x128xi32>
      %cst_28 = arith.constant dense<0.000000e+00> : vector<128xf32>
      %92 = vector.multi_reduction <add>, %21, %cst_28 [1] : vector<128x128xf32> to vector<128xf32>
      %93 = vector.shape_cast %92 : vector<128xf32> to vector<128x1xf32>
      %cst_29 = arith.constant dense<0.000000e+00> : vector<128xf32>
      %94 = vector.multi_reduction <add>, %85, %cst_29 [1] : vector<128x128xf32> to vector<128xf32>
      %95 = vector.shape_cast %94 : vector<128xf32> to vector<128x1xf32>
      %cst_30 = arith.constant 0.000000e+00 : f32
      %96 = vector.broadcast %cst_30 : f32 to vector<128x128xf32>
      %97 = arith.select %91, %21, %96 : vector<128x128xi1>, vector<128x128xf32>
      %cst_31 = arith.constant dense<0.000000e+00> : vector<128xf32>
      %98 = vector.multi_reduction <add>, %97, %cst_31 [1] : vector<128x128xf32> to vector<128xf32>
      %99 = vector.shape_cast %98 : vector<128xf32> to vector<128x1xf32>
      %c0_32 = arith.constant 0 : index
      %c0_33 = arith.constant 0 : index
      %100 = vector.load %arg5[%c0_32, %c0_33] : memref<128x128xf32, #tpu.memory_space<vmem>>, vector<128x1xf32>
      %101 = arith.addf %100, %93 : vector<128x1xf32>
      %c0_34 = arith.constant 0 : index
      %c0_35 = arith.constant 0 : index
      %102 = vector.load %arg5[%c0_34, %c0_35] : memref<128x128xf32, #tpu.memory_space<vmem>>, vector<128x1xf32>
      tpu.vector_store %arg5[%c0_34, %c0_35], %101 {strides = array<i32>} : memref<128x128xf32, #tpu.memory_space<vmem>>, vector<128x1xf32>,
      %c0_36 = arith.constant 0 : index
      %c1 = arith.constant 1 : index
      %103 = vector.load %arg5[%c0_36, %c1] : memref<128x128xf32, #tpu.memory_space<vmem>>, vector<128x1xf32>
      %104 = arith.addf %103, %99 : vector<128x1xf32>
      %c0_37 = arith.constant 0 : index
      %c1_38 = arith.constant 1 : index
      %105 = vector.load %arg5[%c0_37, %c1_38] : memref<128x128xf32, #tpu.memory_space<vmem>>, vector<128x1xf32>
      tpu.vector_store %arg5[%c0_37, %c1_38], %104 {strides = array<i32>} : memref<128x128xf32, #tpu.memory_space<vmem>>, vector<128x1xf32>,
      %c0_39 = arith.constant 0 : index
      %c2 = arith.constant 2 : index
      %106 = vector.load %arg5[%c0_39, %c2] : memref<128x128xf32, #tpu.memory_space<vmem>>, vector<128x1xf32>
      %107 = arith.addf %106, %95 : vector<128x1xf32>
      %c0_40 = arith.constant 0 : index
      %c2_41 = arith.constant 2 : index
      %108 = vector.load %arg5[%c0_40, %c2_41] : memref<128x128xf32, #tpu.memory_space<vmem>>, vector<128x1xf32>
      tpu.vector_store %arg5[%c0_40, %c2_41], %107 {strides = array<i32>} : memref<128x128xf32, #tpu.memory_space<vmem>>, vector<128x1xf32>,
    } else {
    }
    %c0_i32_6 = arith.constant 0 : i32
    %8 = arith.cmpi eq, %arg1, %c0_i32_6 : i32
    %9 = arith.extui %8 : i1 to i32
    %c0_i32_7 = arith.constant 0 : i32
    %10 = arith.cmpi ne, %9, %c0_i32_7 : i32
    scf.if %10 {
      %cst = arith.constant 0.000000e+00 : f32
      %14 = vector.broadcast %cst : f32 to vector<128x128xf32>
      %15 = arith.maximumf %3, %14 : vector<128x128xf32>
      %16 = math.absf %3 : vector<128x128xf32>
      %cst_10 = arith.constant 0.000000e+00 : f32
      %17 = vector.broadcast %cst_10 : f32 to vector<128x128xf32>
      %18 = arith.subf %17, %16 : vector<128x128xf32>
      %19 = math.exp %18 : vector<128x128xf32>
      %20 = math.log1p %19 : vector<128x128xf32>
      %21 = arith.addf %15, %20 : vector<128x128xf32>
      %cst_11 = arith.constant 0.000000e+00 : f32
      %22 = vector.broadcast %cst_11 : f32 to vector<128x128xf32>
      %23 = arith.cmpf ogt, %21, %22 : vector<128x128xf32>
      %cst_12 = arith.constant 1.17549435E-38 : f32
      %24 = vector.broadcast %cst_12 : f32 to vector<128x128xf32>
      %25 = arith.maximumf %21, %24 : vector<128x128xf32>
      %26 = tpu.bitcast %25 : vector<128x128xf32> -> vector<128x128xi32>
      %c23_i32 = arith.constant 23 : i32
      %27 = vector.broadcast %c23_i32 : i32 to vector<128x128xi32>
      %28 = arith.shrsi %26, %27 : vector<128x128xi32>
      %c126_i32 = arith.constant 126 : i32
      %29 = vector.broadcast %c126_i32 : i32 to vector<128x128xi32>
      %30 = arith.subi %28, %29 : vector<128x128xi32>
      %c8388607_i32 = arith.constant 8388607 : i32
      %31 = vector.broadcast %c8388607_i32 : i32 to vector<128x128xi32>
      %32 = arith.andi %26, %31 : vector<128x128xi32>
      %c1056964608_i32 = arith.constant 1056964608 : i32
      %33 = vector.broadcast %c1056964608_i32 : i32 to vector<128x128xi32>
      %34 = arith.ori %32, %33 : vector<128x128xi32>
      %35 = tpu.bitcast %34 : vector<128x128xi32> -> vector<128x128xf32>
      %cst_13 = arith.constant 0.707106769 : f32
      %36 = vector.broadcast %cst_13 : f32 to vector<128x128xf32>
      %37 = arith.cmpf olt, %35, %36 : vector<128x128xf32>
      %c1_i32 = arith.constant 1 : i32
      %38 = vector.broadcast %c1_i32 : i32 to vector<128x128xi32>
      %39 = arith.subi %30, %38 : vector<128x128xi32>
      %40 = arith.select %37, %39, %30 : vector<128x128xi1>, vector<128x128xi32>
      %41 = arith.sitofp %40 : vector<128x128xi32> to vector<128x128xf32>
      %42 = arith.addf %35, %35 : vector<128x128xf32>
      %43 = arith.select %37, %42, %35 : vector<128x128xi1>, vector<128x128xf32>
      %cst_14 = arith.constant 1.000000e+00 : f32
      %44 = vector.broadcast %cst_14 : f32 to vector<128x128xf32>
      %45 = arith.subf %43, %44 : vector<128x128xf32>
      %46 = arith.mulf %45, %45 : vector<128x128xf32>
      %cst_15 = arith.constant 0.0703768358 : f32
      %47 = vector.broadcast %cst_15 : f32 to vector<128x128xf32>
      %48 = arith.mulf %47, %45 : vector<128x128xf32>
      %cst_16 = arith.constant 0.115146101 : f32
      %49 = vector.broadcast %cst_16 : f32 to vector<128x128xf32>
      %50 = arith.subf %48, %49 : vector<128x128xf32>
      %51 = arith.mulf %50, %45 : vector<128x128xf32>
      %cst_17 = arith.constant 0.116769984 : f32
      %52 = vector.broadcast %cst_17 : f32 to vector<128x128xf32>
      %53 = arith.addf %51, %52 : vector<128x128xf32>
      %54 = arith.mulf %53, %45 : vector<128x128xf32>
      %cst_18 = arith.constant 0.12420141 : f32
      %55 = vector.broadcast %cst_18 : f32 to vector<128x128xf32>
      %56 = arith.subf %54, %55 : vector<128x128xf32>
      %57 = arith.mulf %56, %45 : vector<128x128xf32>
      %cst_19 = arith.constant 0.142493233 : f32
      %58 = vector.broadcast %cst_19 : f32 to vector<128x128xf32>
      %59 = arith.addf %57, %58 : vector<128x128xf32>
      %60 = arith.mulf %59, %45 : vector<128x128xf32>
      %cst_20 = arith.constant 0.166680574 : f32
      %61 = vector.broadcast %cst_20 : f32 to vector<128x128xf32>
      %62 = arith.subf %60, %61 : vector<128x128xf32>
      %63 = arith.mulf %62, %45 : vector<128x128xf32>
      %cst_21 = arith.constant 0.200007141 : f32
      %64 = vector.broadcast %cst_21 : f32 to vector<128x128xf32>
      %65 = arith.addf %63, %64 : vector<128x128xf32>
      %66 = arith.mulf %65, %45 : vector<128x128xf32>
      %cst_22 = arith.constant 0.24999994 : f32
      %67 = vector.broadcast %cst_22 : f32 to vector<128x128xf32>
      %68 = arith.subf %66, %67 : vector<128x128xf32>
      %69 = arith.mulf %68, %45 : vector<128x128xf32>
      %cst_23 = arith.constant 0.333333313 : f32
      %70 = vector.broadcast %cst_23 : f32 to vector<128x128xf32>
      %71 = arith.addf %69, %70 : vector<128x128xf32>
      %72 = arith.mulf %71, %45 : vector<128x128xf32>
      %73 = arith.mulf %72, %46 : vector<128x128xf32>
      %cst_24 = arith.constant -2.12194442E-4 : f32
      %74 = vector.broadcast %cst_24 : f32 to vector<128x128xf32>
      %75 = arith.mulf %41, %74 : vector<128x128xf32>
      %76 = arith.addf %73, %75 : vector<128x128xf32>
      %cst_25 = arith.constant 5.000000e-01 : f32
      %77 = vector.broadcast %cst_25 : f32 to vector<128x128xf32>
      %78 = arith.mulf %77, %46 : vector<128x128xf32>
      %79 = arith.subf %76, %78 : vector<128x128xf32>
      %80 = arith.addf %45, %79 : vector<128x128xf32>
      %cst_26 = arith.constant 0.693359375 : f32
      %81 = vector.broadcast %cst_26 : f32 to vector<128x128xf32>
      %82 = arith.mulf %41, %81 : vector<128x128xf32>
      %83 = arith.addf %80, %82 : vector<128x128xf32>
      %cst_27 = arith.constant 0xFF800000 : f32
      %84 = vector.broadcast %cst_27 : f32 to vector<128x128xf32>
      %85 = arith.select %23, %83, %84 : vector<128x128xi1>, vector<128x128xf32>
      %86 = tpu.iota {dimensions = array<i32: 1>} : vector<128x128xi32>
      %c128_i32 = arith.constant 128 : i32
      %87 = arith.muli %arg1, %c128_i32 : i32
      %88 = vector.broadcast %87 : i32 to vector<128x1xi32>
      %89 = arith.subi %4, %88 : vector<128x1xi32>
      %90 = vector.broadcast %89 : vector<128x1xi32> to vector<128x128xi32>
      %91 = arith.cmpi eq, %86, %90 : vector<128x128xi32>
      %c128_i32_28 = arith.constant 128 : i32
      %92 = arith.muli %arg1, %c128_i32_28 : i32
      %c32_i32 = arith.constant 32 : i32
      %93 = arith.subi %c32_i32, %92 : i32
      %94 = vector.broadcast %93 : i32 to vector<128x128xi32>
      %95 = arith.cmpi slt, %86, %94 : vector<128x128xi32>
      %cst_29 = arith.constant 0.000000e+00 : f32
      %96 = vector.broadcast %cst_29 : f32 to vector<128x128xf32>
      %97 = arith.select %95, %21, %96 : vector<128x128xi1>, vector<128x128xf32>
      %cst_30 = arith.constant dense<0.000000e+00> : vector<128xf32>
      %98 = vector.multi_reduction <add>, %97, %cst_30 [1] : vector<128x128xf32> to vector<128xf32>
      %99 = vector.shape_cast %98 : vector<128xf32> to vector<128x1xf32>
      %cst_31 = arith.constant 0.000000e+00 : f32
      %100 = vector.broadcast %cst_31 : f32 to vector<128x128xf32>
      %101 = arith.select %95, %85, %100 : vector<128x128xi1>, vector<128x128xf32>
      %cst_32 = arith.constant dense<0.000000e+00> : vector<128xf32>
      %102 = vector.multi_reduction <add>, %101, %cst_32 [1] : vector<128x128xf32> to vector<128xf32>
      %103 = vector.shape_cast %102 : vector<128xf32> to vector<128x1xf32>
      %cst_33 = arith.constant 0.000000e+00 : f32
      %104 = vector.broadcast %cst_33 : f32 to vector<128x128xf32>
      %105 = arith.select %91, %21, %104 : vector<128x128xi1>, vector<128x128xf32>
      %cst_34 = arith.constant dense<0.000000e+00> : vector<128xf32>
      %106 = vector.multi_reduction <add>, %105, %cst_34 [1] : vector<128x128xf32> to vector<128xf32>
      %107 = vector.shape_cast %106 : vector<128xf32> to vector<128x1xf32>
      %c0_35 = arith.constant 0 : index
      %c0_36 = arith.constant 0 : index
      %108 = vector.load %arg5[%c0_35, %c0_36] : memref<128x128xf32, #tpu.memory_space<vmem>>, vector<128x1xf32>
      %109 = arith.addf %108, %99 : vector<128x1xf32>
      %c0_37 = arith.constant 0 : index
      %c0_38 = arith.constant 0 : index
      %110 = vector.load %arg5[%c0_37, %c0_38] : memref<128x128xf32, #tpu.memory_space<vmem>>, vector<128x1xf32>
      tpu.vector_store %arg5[%c0_37, %c0_38], %109 {strides = array<i32>} : memref<128x128xf32, #tpu.memory_space<vmem>>, vector<128x1xf32>,
      %c0_39 = arith.constant 0 : index
      %c1 = arith.constant 1 : index
      %111 = vector.load %arg5[%c0_39, %c1] : memref<128x128xf32, #tpu.memory_space<vmem>>, vector<128x1xf32>
      %112 = arith.addf %111, %107 : vector<128x1xf32>
      %c0_40 = arith.constant 0 : index
      %c1_41 = arith.constant 1 : index
      %113 = vector.load %arg5[%c0_40, %c1_41] : memref<128x128xf32, #tpu.memory_space<vmem>>, vector<128x1xf32>
      tpu.vector_store %arg5[%c0_40, %c1_41], %112 {strides = array<i32>} : memref<128x128xf32, #tpu.memory_space<vmem>>, vector<128x1xf32>,
      %c0_42 = arith.constant 0 : index
      %c2 = arith.constant 2 : index
      %114 = vector.load %arg5[%c0_42, %c2] : memref<128x128xf32, #tpu.memory_space<vmem>>, vector<128x1xf32>
      %115 = arith.addf %114, %103 : vector<128x1xf32>
      %c0_43 = arith.constant 0 : index
      %c2_44 = arith.constant 2 : index
      %116 = vector.load %arg5[%c0_43, %c2_44] : memref<128x128xf32, #tpu.memory_space<vmem>>, vector<128x1xf32>
      tpu.vector_store %arg5[%c0_43, %c2_44], %115 {strides = array<i32>} : memref<128x128xf32, #tpu.memory_space<vmem>>, vector<128x1xf32>,
    } else {
    }
    %c0_i32_8 = arith.constant 0 : i32
    %11 = arith.cmpi eq, %arg1, %c0_i32_8 : i32
    %12 = arith.extui %11 : i1 to i32
    %c0_i32_9 = arith.constant 0 : i32
    %13 = arith.cmpi ne, %12, %c0_i32_9 : i32
    scf.if %13 {
      %c0_10 = arith.constant 0 : index
      %c0_11 = arith.constant 0 : index
      %14 = vector.load %arg5[%c0_10, %c0_11] : memref<128x128xf32, #tpu.memory_space<vmem>>, vector<128x1xf32>
      %cst = arith.constant 9.99999993E-9 : f32
      %15 = vector.broadcast %cst : f32 to vector<128x1xf32>
      %16 = arith.addf %14, %15 : vector<128x1xf32>
      %c0_12 = arith.constant 0 : index
      %c1 = arith.constant 1 : index
      %17 = vector.load %arg5[%c0_12, %c1] : memref<128x128xf32, #tpu.memory_space<vmem>>, vector<128x1xf32>
      %cst_13 = arith.constant 9.99999993E-9 : f32
      %18 = vector.broadcast %cst_13 : f32 to vector<128x1xf32>
      %19 = arith.addf %17, %18 : vector<128x1xf32>
      %c0_14 = arith.constant 0 : index
      %c2 = arith.constant 2 : index
      %20 = vector.load %arg5[%c0_14, %c2] : memref<128x128xf32, #tpu.memory_space<vmem>>, vector<128x1xf32>
      %21 = math.log %16 : vector<128x1xf32>
      %22 = math.log %19 : vector<128x1xf32>
      %23 = arith.subf %22, %21 : vector<128x1xf32>
      %cst_15 = arith.constant 0.000000e+00 : f32
      %24 = vector.broadcast %cst_15 : f32 to vector<128x1xf32>
      %25 = arith.subf %24, %23 : vector<128x1xf32>
      %cst_16 = arith.constant 3.200000e+01 : f32
      %26 = vector.broadcast %cst_16 : f32 to vector<128x1xf32>
      %27 = arith.mulf %26, %21 : vector<128x1xf32>
      %28 = arith.subf %20, %27 : vector<128x1xf32>
      %cst_17 = arith.constant 0.000000e+00 : f32
      %29 = vector.broadcast %cst_17 : f32 to vector<128x1xf32>
      %30 = arith.subf %29, %28 : vector<128x1xf32>
      %cst_18 = arith.constant 3.200000e+01 : f32
      %31 = vector.broadcast %cst_18 : f32 to vector<128x1xf32>
      %32 = arith.divf %30, %31 : vector<128x1xf32>
      %cst_19 = arith.constant 9.990000e-01 : f32
      %33 = vector.broadcast %cst_19 : f32 to vector<128x1xf32>
      %34 = arith.mulf %33, %25 : vector<128x1xf32>
      %cst_20 = arith.constant 1.000000e-03 : f32
      %35 = vector.broadcast %cst_20 : f32 to vector<128x1xf32>
      %36 = arith.mulf %35, %32 : vector<128x1xf32>
      %37 = arith.addf %34, %36 : vector<128x1xf32>
      %c0_21 = arith.constant 0 : index
      %c0_22 = arith.constant 0 : index
      %38 = vector.load %arg4[%c0_21, %c0_22] : memref<128x1xf32, #tpu.memory_space<vmem>>, vector<128x1xf32>
      tpu.vector_store %arg4[%c0_21, %c0_22], %37 {strides = array<i32>} : memref<128x1xf32, #tpu.memory_space<vmem>>, vector<128x1xf32>,
    } else {
    }
    return
  }
  func.func @transform_0(%arg0: i32, %arg1: i32) -> (i32, i32) {
    %c0_i32 = arith.constant 0 : i32
    return %arg0, %arg1 : i32, i32
  }
  func.func @transform_1(%arg0: i32, %arg1: i32) -> (i32, i32) {
    %c0_i32 = arith.constant 0 : i32
    %c0_i32_0 = arith.constant 0 : i32
    return %arg0, %c0_i32 : i32, i32
  }
  func.func @transform_2(%arg0: i32, %arg1: i32) -> (i32, i32) {
    %c0_i32 = arith.constant 0 : i32
    %c0_i32_0 = arith.constant 0 : i32
    return %arg0, %c0_i32 : i32, i32
  }
}

</mosaic_0001>

<bundles_post_ra>
// kernel: tpu_custom_call.1
= control target key start
LH: loop header
LB: loop body
LE: loop exit
PB: predicated region body
PF: predicated region fallthrough
CT: control target
= control target key end

     0   :  { %v3427_v0 = vmov 0   ;;  %v2237_v50 = vlaneseq  ;;  %s3430_s16 = smov 1   ;;  %s3431_s17 = smov 127   ;;  %s4967_s1 = inlined_call_operand.vmem [shape: s32[128,1], index: 1, kind: input, shape index: {}]   ;;  %s4968_s0 = inlined_call_operand.vmem [shape: f32[128,128], index: 0, kind: input, shape index: {}]   ;;  %s4969_s2 = inlined_call_operand.vmem [shape: f32[128,1], index: 2, kind: output, shape index: {}]  }
   0x1   :  { %3330 = vset.pattern.permute.xlu1 %v3427_v0  ;;  %3329 = vset.pattern.permute.xlu0 %v3427_v0  ;;  %v49_v1 = vld [vmem:[%s4967_s1 + $0x10] sm:$0xff]  ;;  %v47_v2 = vld [vmem:[%s4967_s1] sm:$0xff]  ;;  %v50_v3 = vld [vmem:[%s4967_s1 + $0x18] sm:$0xff] }
   0x2   :  { %2264 = vperm.xlu1 %3330, %v49_v1   ;;  %2258 = vperm.xlu0 %3329, %v47_v2   ;;  %v48_v4 = vld [vmem:[%s4967_s1 + $0x8] sm:$0xff]  ;;  %v3467_v6 = vld [vmem:[%s4968_s0] sm:$0xff]  ;;  %v3485_v12 = vld [vmem:[%s4968_s0 + $0x10] sm:$0xff]  ;;  %v3560_v60 = vand.u32 127, %v2237_v50 }
   0x3   :  { %v3462_v5 = vld [vmem:[%s4968_s0 + $0x8] sm:$0xff]  ;;  %v51_v8 = vld [vmem:[%s4967_s1 + $0x20] sm:$0xff]  ;;  %v1341_v10 = vand.u32 2147483647, %v3467_v6  ;;  %v3490_v13 = vld [vmem:[%s4968_s0 + $0x30] sm:$0xff]  ;;  %v1325_v0 = vmax.f32 %v3467_v6, 0.0 }
   0x4   :  { %v52_v7 = vld [vmem:[%s4967_s1 + $0x28] sm:$0xff]  ;;  %v1342_v9 = vand.u32 2147483647, %v3462_v5  ;;  %v3480_v11 = vld [vmem:[%s4968_s0 + $0x20] sm:$0xff]  ;;  %v3496_v17 = vld [vmem:[%s4968_s0 + $0x18] sm:$0xff]  ;;  %v1326_v63 = vmax.f32 %v3462_v5, 0.0 }
   0x5   :  { %v1357_v15 = vsub.f32 0.0, %v1341_v10  ;;  %v1345_v16 = vand.u32 2147483647, %v3480_v11  ;;  %v54_v18 = vld [vmem:[%s4967_s1 + $0x38] sm:$0xff]  ;;  %v1343_v19 = vand.u32 2147483647, %v3485_v12 }
   0x6   :  { %2267 = vperm.xlu1 %3330, %v50_v3   ;;  %2261 = vperm.xlu0 %3329, %v48_v4   ;;  %v1358_v14 = vsub.f32 0.0, %v1342_v9  ;;  %v1347_v20 = vand.u32 2147483647, %v3490_v13  ;;  %v53_v21 = vld [vmem:[%s4967_s1 + $0x30] sm:$0xff]  ;;  %v1344_v26 = vand.u32 2147483647, %v3496_v17 }
   0x7   :  { %v1373_v23 = vmul.f32 1.442695, %v1357_v15  ;;  %v1361_v24 = vsub.f32 0.0, %v1345_v16  ;;  %v1359_v25 = vsub.f32 0.0, %v1343_v19  ;;  %v3510_v27 = vld [vmem:[%s4968_s0 + $0x40] sm:$0xff]  ;;  %v3515_v28 = vld [vmem:[%s4968_s0 + $0x28] sm:$0xff] }
   0x8   :  { %v1375_v22 = vmul.f32 1.442695, %v1358_v14  ;;  %v1363_v30 = vsub.f32 0.0, %v1347_v20  ;;  %v1349_v31 = vand.u32 2147483647, %v3510_v27  ;;  %v3521_v32 = vld [vmem:[%s4968_s0 + $0x50] sm:$0xff] }
   0x9   :  { %v1381_v29 = vmul.f32 1.442695, %v1361_v24  ;;  %v1377_v33 = vmul.f32 1.442695, %v1359_v25  ;;  %v1360_v34 = vsub.f32 0.0, %v1344_v26  ;;  %v56_v35 = vld [vmem:[%s4967_s1 + $0x48] sm:$0xff] }
   0xa   :  { %2273 = vperm.xlu1 %3330, %v52_v7   ;;  %2270 = vperm.xlu0 %3329, %v51_v8   ;;  %3331 = vpow2.f32 %v1375_v22  ;;  %v55_v36 = vld [vmem:[%s4967_s1 + $0x40] sm:$0xff]  ;;  %v1365_v37 = vsub.f32 0.0, %v1349_v31  ;;  %v1346_v38 = vand.u32 2147483647, %v3515_v28  ;;  %v1351_v39 = vand.u32 2147483647, %v3521_v32 }
   0xb   :  { %3333 = vpow2.f32 %v1373_v23  ;;  %v3534_v40 = vld [vmem:[%s4968_s0 + $0x38] sm:$0xff]  ;;  %v1385_v41 = vmul.f32 1.442695, %v1363_v30  ;;  %v3539_v43 = vld [vmem:[%s4968_s0 + $0x60] sm:$0xff]  ;;  %v1379_v44 = vmul.f32 1.442695, %v1360_v34 }
   0xc   :  { %3335 = vpow2.f32 %v1381_v29  ;;  %v1362_v42 = vsub.f32 0.0, %v1346_v38  ;;  %v1367_v45 = vsub.f32 0.0, %v1351_v39  ;;  %v58_v46 = vld [vmem:[%s4967_s1 + $0x58] sm:$0xff]  ;;  %v57_v47 = vld [vmem:[%s4967_s1 + $0x50] sm:$0xff]  ;;  %v1389_v48 = vmul.f32 1.442695, %v1365_v37 }
   0xd   :  { %3337 = vpow2.f32 %v1377_v33  ;;  %v1348_v49 = vand.u32 2147483647, %v3534_v40  ;;  %v1353_v51 = vand.u32 2147483647, %v3539_v43  ;;  %v60_v55 = vld [vmem:[%s4967_s1 + $0x68] sm:$0xff]  ;;  %v59_v56 = vld [vmem:[%s4967_s1 + $0x60] sm:$0xff] }
   0xe   :  { %2279 = vperm.xlu1 %3330, %v54_v18   ;;  %2276 = vperm.xlu0 %3329, %v53_v21   ;;  %3339 = vpow2.f32 %v1385_v41  ;;  %v1383_v52 = vmul.f32 1.442695, %v1362_v42  ;;  %v1393_v53 = vmul.f32 1.442695, %v1367_v45  ;;  %v62_v3 = vld [vmem:[%s4967_s1 + $0x78] sm:$0xff]  ;;  %v1329_v4 = vmax.f32 %v3480_v11, 0.0 }
   0xf   :  { %3341 = vpow2.f32 %v1379_v44  ;;  %v1364_v57 = vsub.f32 0.0, %v1348_v49  ;;  %v1369_v61 = vsub.f32 0.0, %v1353_v51  ;;  %v1327_v8 = vmax.f32 %v3485_v12, 0.0  ;;  %v3578_v9 = vld [vmem:[%s4968_s0 + $0x48] sm:$0xff]  ;;  %v61_v10 = vld [vmem:[%s4967_s1 + $0x70] sm:$0xff] }
  0x10   :  { %3343 = vpow2.f32 %v1389_v48  ;;  %v1331_v14 = vmax.f32 %v3490_v13, 0.0  ;;  %v3588_v18 = vld [vmem:[%s4968_s0 + $0x70] sm:$0xff]  ;;  %v1333_v19 = vmax.f32 %v3510_v27, 0.0  ;;  %v1350_v25 = vand.u32 2147483647, %v3578_v9 }
  0x11   :  { %3345 = vpow2.f32 %v1383_v52  ;;  %v1387_v16 = vmul.f32 1.442695, %v1364_v57  ;;  %v1397_v22 = vmul.f32 1.442695, %v1369_v61  ;;  %v1355_v30 = vand.u32 2147483647, %v3588_v18 }
  0x12   :  { %2285 = vperm.xlu1 %3330, %v56_v35   ;;  %2282 = vperm.xlu0 %3329, %v55_v36   ;;  %3347 = vpow2.f32 %v1393_v53  ;;  %v3607_v36 = vld [vmem:[%s4968_s0 + $0x58] sm:$0xff]  ;;  %vm2323_vm2 = vcmp.lt.s32.totalorder %v3560_v60, 32 }
  0x13   :  { %v3625_v50 = vsub.f32 0.0, %v1355_v30  ;;  %v1352_v51 = vand.u32 2147483647, %v3607_v36 }
  0x14   :  { %v3549_v54 = vpop.eup %3331 }
  0x15   :  { %v3557_v58 = vpop.eup %3333  ;;  %v1414_v59 = vadd.f32 1.0, %v3549_v54  ;;  %v1417_v23 = vmul.f32 -0.5, %v3549_v54  ;;  %v1420_v38 = vand.u32 2147483647, %v3549_v54 }
  0x16   :  { %2291 = vperm.xlu1 %3330, %v58_v46   ;;  %2288 = vperm.xlu0 %3329, %v57_v47   ;;  %v3562_v62 = vpop.eup %3335  ;;  %v1405_v1 = vadd.f32 1.0, %v3557_v58  ;;  %v1408_v26 = vmul.f32 -0.5, %v3557_v58  ;;  %v1411_v45 = vand.u32 2147483647, %v3557_v58  ;;  %v3617_v46 = vsub.f32 0.0, %v1350_v25  ;;  %v3622_v47 = vld [vmem:[%s4968_s0 + $0x68] sm:$0xff] }
  0x17   :  { %v3567_v2 = vpop.eup %3337  ;;  %v1441_v7 = vadd.f32 1.0, %v3562_v62  ;;  %3349 = vlog2.f32 %v1414_v59  ;;  %v1444_v33 = vmul.f32 -0.5, %v3562_v62  ;;  %v1418_v44 = vadd.f32 1.0, %v1417_v23 }
  0x18   :  { %3351 = vlog2.f32 %v1405_v1  ;;  %v1423_v24 = vadd.f32 1.0, %v3567_v2  ;;  %v3599_v31 = vpop.eup %3339  ;;  %v1409_v48 = vadd.f32 1.0, %v1408_v26  ;;  %vm3635_vm0 = vcmp.lt.f32.partialorder %v1420_v38, 0.0004427343 }
  0x19   :  { %3353 = vlog2.f32 %v1441_v7  ;;  %v3609_v37 = vpop.eup %3341  ;;  %v1459_v49 = vadd.f32 1.0, %v3599_v31  ;;  %v1445_v53 = vadd.f32 1.0, %v1444_v33  ;;  %v1426_v1 = vmul.f32 -0.5, %v3567_v2 }
  0x1a   :  { %2297 = vperm.xlu1 %3330, %v60_v55   ;;  %2294 = vperm.xlu0 %3329, %v59_v56   ;;  %3355 = vpow2.f32 %v1387_v16  ;;  %v3614_v42 = vpop.eup %3343  ;;  %v1447_v55 = vand.u32 2147483647, %v3562_v62  ;;  %v1432_v56 = vadd.f32 1.0, %v3609_v37  ;;  %v1354_v7 = vand.u32 2147483647, %v3622_v47 }
  0x1b   :  { %3357 = vpow2.f32 %v1397_v22  ;;  %v3628_v52 = vpop.eup %3345  ;;  %v1419_v16 = vmul.f32 %v3549_v54, %v1418_v44  ;;  %vm3643_vm1 = vcmp.lt.f32.partialorder %v1411_v45, 0.0004427343  ;;  %v1429_v23 = vand.u32 2147483647, %v3567_v2 }
  0x1c   :  { %3359 = vlog2.f32 %v1423_v24  ;;  %v3633_v59 = vpop.eup %3347  ;;  %v1462_v24 = vmul.f32 -0.5, %v3599_v31  ;;  %v1410_v25 = vmul.f32 %v3557_v58, %v1409_v48  ;;  %v1435_v26 = vmul.f32 -0.5, %v3609_v37 }
  0x1d   :  { %3361 = vlog2.f32 %v1459_v49  ;;  %v1450_v30 = vadd.f32 1.0, %v3628_v52  ;;  %v1446_v54 = vmul.f32 %v3562_v62, %v1445_v53  ;;  %vm3654_vm3 = vcmp.lt.f32.partialorder %v1447_v55, 0.0004427343 }
  0x1e   :  { %2303 = vperm.xlu1 %3330, %v62_v3   ;;  %2300 = vperm.xlu0 %3329, %v61_v10   ;;  %v1477_v3 = vadd.f32 1.0, %v3614_v42  ;;  %3363 = vlog2.f32 %v1432_v56  ;;  %v1495_v44 = vadd.f32 1.0, %v3633_v59  ;;  %v1427_v41 = vadd.f32 1.0, %v1426_v1 }
  0x1f   :  { %v1480_v58 = vmul.f32 -0.5, %v3614_v42  ;;  %vm3662_vm4 = vcmp.lt.f32.partialorder %v1429_v23, 0.0004427343  ;;  %v1463_v62 = vadd.f32 1.0, %v1462_v24  ;;  %v1465_v53 = vand.u32 2147483647, %v3599_v31 }
  0x20   :  { %3365 = vlog2.f32 %v1477_v3  ;;  %v1453_v55 = vmul.f32 -0.5, %v3628_v52  ;;  %v1436_v35 = vadd.f32 1.0, %v1435_v26  ;;  %v1438_v1 = vand.u32 2147483647, %v3609_v37 }
  0x21   :  { %v3350_v10 = vpop.eup %3349  ;;  %3367 = vlog2.f32 %v1450_v30  ;;  %v1483_v34 = vand.u32 2147483647, %v3614_v42  ;;  %v1498_v23 = vmul.f32 -0.5, %v3633_v59  ;;  %v1481_v29 = vadd.f32 1.0, %v1480_v58 }
  0x22   :  { %v3352_v33 = vpop.eup %3351  ;;  %v1416_v57 = vmul.f32 0.6931472, %v3350_v10  ;;  %3369 = vlog2.f32 %v1495_v44  ;;  %v1456_v21 = vand.u32 2147483647, %v3628_v52  ;;  %v1428_v26 = vmul.f32 %v3567_v2, %v1427_v41 }
  0x23   :  { %v3354_v45 = vpop.eup %3353  ;;  %v1407_v39 = vmul.f32 0.6931472, %v3352_v33  ;;  %vm3678_vm5 = vcmp.lt.f32.partialorder %v1465_v53, 0.0004427343  ;;  %v1454_v30 = vadd.f32 1.0, %v1453_v55  ;;  %v3694_v41 = vmul.f32 %v3609_v37, %v1436_v35 }
  0x24   :  { %v3660_v48 = vpop.eup %3355  ;;  %v1443_v10 = vmul.f32 0.6931472, %v3354_v45  ;;  %v1422_v24 = vsel %vm3635_vm0, %v1419_v16, %v1416_v57  ;;  %v1464_v57 = vmul.f32 %v3599_v31, %v1463_v62  ;;  %v1501_v61 = vand.u32 2147483647, %v3633_v59 }
  0x25   :  { %v3668_v56 = vpop.eup %3357  ;;  %v1468_v20 = vadd.f32 1.0, %v3660_v48  ;;  %v1413_v44 = vsel %vm3643_vm1, %v1410_v25, %v1407_v39  ;;  %v3689_v16 = vadd.f32 %v1422_v24, %v1326_v63  ;;  %vm3696_vm6 = vcmp.lt.f32.partialorder %v1438_v1, 0.0004427343  ;;  %v3748_v1 = vld [vmem:[%s4968_s0 + $0x78] sm:$0xff]  ;;  %s3429_s0 = smov 2  }
  0x26   :  { %v3360_v3 = vpop.eup %3359  ;;  %v1513_v45 = vadd.f32 1.0, %v3668_v56  ;;  %v1449_v2 = vsel %vm3654_vm3, %v1446_v54, %v1443_v10  ;;  %v1499_v39 = vadd.f32 1.0, %v1498_v23  ;;  %v1482_v31 = vmul.f32 %v3614_v42, %v1481_v29 }
  0x27   :  { %v1425_v15 = vmul.f32 0.6931472, %v3360_v3  ;;  %v3362_v22 = vpop.eup %3361  ;;  %vm3701_vm7 = vcmp.lt.f32.partialorder %v1483_v34, 0.0004427343  ;;  %vm3705_vm8 = vcmp.lt.f32.partialorder %v1456_v21, 0.0004427343  ;;  %3371 = vlog2.f32 %v1468_v20 }
  0x28   :  { %v3364_v63 = vpop.eup %3363  ;;  %v3712_v35 = vsel %vm2323_vm2, %v3689_v16, 0.0  ;;  %v3716_v37 = vadd.f32 %v1413_v44, %v1325_v0  ;;  %v1455_v29 = vmul.f32 %v3628_v52, %v1454_v30  ;;  %3373 = vlog2.f32 %v1513_v45 }
  0x29   :  { %v3721_v21 = vadd.f32 %v1449_v2, %v1329_v4  ;;  %v1431_v20 = vsel %vm3662_vm4, %v1428_v26, %v1425_v15  ;;  %vm3725_vm9 = vcmp.lt.f32.partialorder %v1501_v61, 0.0004427343  ;;  %v1391_v54 = vmul.f32 1.442695, %v3617_v46 }
  0x2a   :  { %v3366_v34 = vpop.eup %3365  ;;  %v2324_v6 = vsel %vm2323_vm2, %v3716_v37, 0.0  ;;  %v1461_v0 = vmul.f32 0.6931472, %v3362_v22  ;;  %v1500_v52 = vmul.f32 %v3633_v59, %v1499_v39  ;;  %v1471_v11 = vmul.f32 -0.5, %v3660_v48 }
  0x2b   :  { %v3368_v4 = vpop.eup %3367  ;;  %v1434_v38 = vmul.f32 0.6931472, %v3364_v63  ;;  %3375 = vpow2.f32 %v1391_v54  ;;  %v1401_v15 = vmul.f32 1.442695, %v3625_v50  ;;  %v1368_v49 = vsub.f32 0.0, %v1352_v51 }
  0x2c   :  { %v3370_v62 = vpop.eup %3369  ;;  %v3740_v46 = vadd.f32 %v1431_v20, %v1327_v8  ;;  %v1479_v53 = vmul.f32 0.6931472, %v3366_v34  ;;  %v1474_v55 = vand.u32 2147483647, %v3660_v48  ;;  %v1370_v59 = vsub.f32 0.0, %v1354_v7 }
  0x2d   :  { %v1516_v50 = vmul.f32 -0.5, %v3668_v56  ;;  %3377 = vpow2.f32 %v1401_v15  ;;  %v1395_v51 = vmul.f32 1.442695, %v1368_v49  ;;  %v1581_v3 = vmax.f32 %v3716_v37, 1.1754944e-38 }
  0x2e   :  { %v1467_v12 = vsel %vm3678_vm5, %v1464_v57, %v1461_v0  ;;  %v1452_v8 = vmul.f32 0.6931472, %v3368_v4  ;;  %v1472_v10 = vadd.f32 1.0, %v1471_v11  ;;  %v1399_v23 = vmul.f32 1.442695, %v1370_v59 }
  0x2f   :  { %v1497_v24 = vmul.f32 0.6931472, %v3370_v62  ;;  %3379 = vpow2.f32 %v1395_v51  ;;  %v1645_v7 = vand.u32 8388607, %v1581_v3  ;;  %v1356_v26 = vand.u32 2147483647, %v3748_v1 }
  0x30   :  { %v2328_v30 = vsel %vm2323_vm2, %v3721_v21, 0.0  ;;  %v2326_v45 = vsel %vm2323_vm2, %v3740_v46, 0.0  ;;  %v1485_v33 = vsel %vm3701_vm7, %v1482_v31, %v1479_v53  ;;  %3381 = vpow2.f32 %v1399_v23 }
  0x31   :  { %v3372_v44 = vpop.eup %3371  ;;  %v3767_v57 = vadd.f32 %v1467_v12, %v1331_v14  ;;  %v1440_v61 = vsel %vm3696_vm6, %v3694_v41, %v1434_v38  ;;  %v1517_v2 = vadd.f32 1.0, %v1516_v50  ;;  %v3772_v39 = vor.u32 1056964608, %v1645_v7 }
  0x32   :  { %v3374_v22 = vpop.eup %3373  ;;  %v1458_v63 = vsel %vm3705_vm8, %v1455_v29, %v1452_v8  ;;  %v1519_v25 = vand.u32 2147483647, %v3668_v56  ;;  %v1372_v31 = vsub.f32 0.0, %v1356_v26  ;;  %v1583_v34 = vmax.f32 %v3740_v46, 1.1754944e-38 }
  0x33   :  { %v3780_v13 = vadd.f32 %v1485_v33, %v1333_v19  ;;  %v1503_v14 = vsel %vm3725_vm9, %v1500_v52, %v1497_v24  ;;  %v1473_v41 = vmul.f32 %v3660_v48, %v1472_v10  ;;  %vm3785_vm10 = vcmp.lt.f32.partialorder %v1474_v55, 0.0004427343 }
  0x34   :  { %v1470_v5 = vmul.f32 0.6931472, %v3372_v44  ;;  %vm1693_vm11 = vcmp.lt.f32.partialorder %v3772_v39, 0.70710677  ;;  %v1757_v29 = vadd.f32 %v3772_v39, %v3772_v39  ;;  %v1403_v20 = vmul.f32 1.442695, %v1372_v31 }
  0x35   :  { %v3376_v27 = vpop.eup %3375  ;;  %v4990_v19 = vmax.f32 %v3496_v17, 0.0  ;;  %v4991_v42 = vmax.f32 %v3515_v28, 0.0  ;;  %v1515_v0 = vmul.f32 0.6931472, %v3374_v22  ;;  %v1518_v52 = vmul.f32 %v3668_v56, %v1517_v2 }
  0x36   :  { %vm3804_vm12 = vcmp.lt.f32.partialorder %v1519_v25, 0.0004427343  ;;  %v1486_v4 = vadd.f32 1.0, %v3376_v27  ;;  %v1647_v17 = vand.u32 8388607, %v1583_v34  ;;  %v4994_v15 = vmax.f32 %v3521_v32, 0.0 }
  0x37   :  { %v3794_v54 = vadd.f32 %v1440_v61, %v4990_v19  ;;  %v3798_v48 = vadd.f32 %v1458_v63, %v4991_v42  ;;  %v3378_v38 = vpop.eup %3377  ;;  %v1773_v49 = vsel %vm1693_vm11, %v1757_v29, %v3772_v39  ;;  %3383 = vpow2.f32 %v1403_v20 }
  0x38   :  { %v3815_v56 = vadd.f32 %v1503_v14, %v4994_v15  ;;  %v2332_v62 = vsel %vm2323_vm2, %v3780_v13, 0.0  ;;  %v1476_v53 = vsel %vm3785_vm10, %v1473_v41, %v1470_v5  ;;  %3385 = vlog2.f32 %v1486_v4 }
  0x39   :  { %v2327_v28 = vsel %vm2323_vm2, %v3794_v54, 0.0  ;;  %v1531_v55 = vadd.f32 1.0, %v3378_v38  ;;  %v3380_v59 = vpop.eup %3379  ;;  %v2329_v32 = vsel %vm2323_vm2, %v3798_v48, 0.0  ;;  %v1521_v50 = vsel %vm3804_vm12, %v1518_v52, %v1515_v0 }
  0x3a   :  { %v1489_v51 = vmul.f32 -0.5, %v3376_v27  ;;  %v1340_v12 = vmax.f32 %v3748_v1, 0.0  ;;  %v3382_v8 = vpop.eup %3381  ;;  %v1504_v10 = vadd.f32 1.0, %v3380_v59  ;;  %v3832_v23 = vadd.f32 -1.0, %v1773_v49 }
  0x3b   :  { %3387 = vlog2.f32 %v1531_v55  ;;  %v3834_v24 = vor.u32 1056964608, %v1647_v17  ;;  %v4995_v7 = vmax.f32 %v3534_v40, 0.0  ;;  %v1522_v33 = vadd.f32 1.0, %v3382_v8 }
  0x3c   :  { %v4996_v44 = vmax.f32 %v3539_v43, 0.0  ;;  %3389 = vlog2.f32 %v1504_v10  ;;  %v1507_v2 = vmul.f32 -0.5, %v3380_v59  ;;  %v1582_v22 = vmax.f32 %v3689_v16, 1.1754944e-38 }
  0x3d   :  { %2340 = vadd.xlane.f32.xlu0 %v2324_v6  ;;  %v2330_v6 = vsel %vm2323_vm2, %v3767_v57, 0.0  ;;  %v3843_v26 = vadd.f32 %v1476_v53, %v4995_v7  ;;  %v1490_v63 = vadd.f32 1.0, %v1489_v51  ;;  %v1492_v25 = vand.u32 2147483647, %v3376_v27 }
  0x3e   :  { %v3847_v61 = vadd.f32 %v1521_v50, %v4996_v44  ;;  %v1537_v31 = vand.u32 2147483647, %v3378_v38  ;;  %3391 = vlog2.f32 %v1522_v33  ;;  %v1525_v14 = vmul.f32 -0.5, %v3382_v8 }
  0x3f   :  { %v3852_v40 = vshra.s32 %v1581_v3, 23  ;;  %v1821_v41 = vmul.f32 0.070376836, %v3832_v23  ;;  %vm1695_vm13 = vcmp.lt.f32.partialorder %v3834_v24, 0.70710677  ;;  %v2331_v43 = vsel %vm2323_vm2, %v3843_v26, 0.0 }
  0x40   :  { %v1510_v5 = vand.u32 2147483647, %v3380_v59  ;;  %v2336_v29 = vsel %vm2323_vm2, %v3847_v61, 0.0  ;;  %v1508_v3 = vadd.f32 1.0, %v1507_v2  ;;  %v1646_v19 = vand.u32 8388607, %v1582_v22 }
  0x41   :  { %2344 = vadd.xlane.f32.xlu0 %v2326_v45  ;;  %v1534_v45 = vmul.f32 -0.5, %v3378_v38  ;;  %v3260_v20 = vadd.f32 -0.1151461, %v1821_v41  ;;  %v3384_v42 = vpop.eup %3383  ;;  %v1491_v0 = vmul.f32 %v3376_v27, %v1490_v63  ;;  %vm3866_vm14 = vcmp.lt.f32.partialorder %v1492_v25, 0.0004427343 }
  0x42   :  { %2342 = vadd.xlane.f32.xlu1 %v3712_v35  ;;  %v3839_v35 = vsel %vm2323_vm2, %v3815_v56, 0.0  ;;  %vm3870_vm15 = vcmp.lt.f32.partialorder %v1537_v31, 0.0004427343  ;;  %v3386_v17 = vpop.eup %3385  ;;  %v1528_v15 = vand.u32 2147483647, %v3382_v8  ;;  %v1540_v53 = vadd.f32 1.0, %v3384_v42 }
  0x43   :  { %v1535_v58 = vadd.f32 1.0, %v1534_v45  ;;  %v1853_v49 = vmul.f32 %v3260_v20, %v3832_v23  ;;  %vm3878_vm0 = vcmp.lt.f32.partialorder %v1510_v5, 0.0004427343  ;;  %v1509_v51 = vmul.f32 %v3380_v59, %v1508_v3 }
  0x44   :  { %3393 = vlog2.f32 %v1540_v53  ;;  %v3884_v7 = vor.u32 1056964608, %v1646_v19  ;;  %v1543_v44 = vmul.f32 -0.5, %v3384_v42  ;;  %v5003_v63 = vmax.f32 %v3578_v9, 0.0 }
  0x45   :  { %2346 = vadd.xlane.f32.xlu0 %v2327_v28  ;;  %v1526_v28 = vadd.f32 1.0, %v1525_v14  ;;  %v1536_v27 = vmul.f32 %v3378_v38, %v1535_v58  ;;  %v3388_v50 = vpop.eup %3387  ;;  %v1869_v10 = vadd.f32 0.116769984, %v1853_v49  ;;  %vm3893_vm1 = vcmp.lt.f32.partialorder %v1528_v15, 0.0004427343 }
  0x46   :  { %2348 = vadd.xlane.f32.xlu1 %v2328_v30  ;;  %v1759_v30 = vadd.f32 %v3834_v24, %v3834_v24  ;;  %v1533_v33 = vmul.f32 0.6931472, %v3388_v50  ;;  %v3390_v2 = vpop.eup %3389  ;;  %v1546_v58 = vand.u32 2147483647, %v3384_v42  ;;  %v1544_v19 = vadd.f32 1.0, %v1543_v44 }
  0x47   :  { %v1527_v31 = vmul.f32 %v3382_v8, %v1526_v28  ;;  %v1885_v14 = vmul.f32 %v3832_v23, %v1869_v10  ;;  %v1585_v8 = vmax.f32 %v3721_v21, 1.1754944e-38  ;;  %vm1694_vm3 = vcmp.lt.f32.partialorder %v3884_v7, 0.70710677 }
  0x48   :  { %v1775_v4 = vsel %vm1695_vm13, %v1759_v30, %v3834_v24  ;;  %v1539_v41 = vsel %vm3870_vm15, %v1536_v27, %v1533_v33  ;;  %v5006_v52 = vmax.f32 %v3588_v18, 0.0  ;;  %v5008_v15 = vmax.f32 %v3622_v47, 0.0 }
  0x49   :  { %2350 = vadd.xlane.f32.xlu0 %v2329_v32  ;;  %v3882_v32 = vadd.f32 -1.0, %v1775_v4  ;;  %v3276_v3 = vadd.f32 -0.12420141, %v1885_v14  ;;  %v5007_v4 = vmax.f32 %v3607_v36, 0.0  ;;  %v3212_v53 = vadd.s32 4294967170, %v3852_v40 }
  0x4a   :  { %2352 = vadd.xlane.f32.xlu1 %v2330_v6  ;;  %v1488_v6 = vmul.f32 0.6931472, %v3386_v17  ;;  %v3911_v11 = vadd.f32 %v1539_v41, %v5006_v52  ;;  %v1758_v18 = vadd.f32 %v3884_v7, %v3884_v7  ;;  %vm3930_vm4 = vcmp.lt.f32.partialorder %v1546_v58, 0.0004427343 }
  0x4b   :  { %v1823_v38 = vmul.f32 0.070376836, %v3882_v32  ;;  %v1917_v28 = vmul.f32 %v3276_v3, %v3832_v23  ;;  %v1615_v47 = vshra.s32 %v1583_v34, 23  ;;  %v1545_v50 = vmul.f32 %v3384_v42, %v1544_v19 }
  0x4c   :  { %v1494_v45 = vsel %vm3866_vm14, %v1491_v0, %v1488_v6  ;;  %v1649_v10 = vand.u32 8388607, %v1585_v8  ;;  %v2338_v33 = vsel %vm2323_vm2, %v3911_v11, 0.0  ;;  %v3228_v44 = vadd.s32 4294967295, %v3212_v53 }
  0x4d   :  { %2354 = vadd.xlane.f32.xlu0 %v2331_v43  ;;  %v3891_v25 = vadd.f32 %v1494_v45, %v5003_v63  ;;  %v1506_v43 = vmul.f32 0.6931472, %v3390_v2  ;;  %v3262_v5 = vadd.f32 -0.1151461, %v1823_v38  ;;  %v1933_v27 = vadd.f32 0.14249323, %v1917_v28 }
  0x4e   :  { %2356 = vadd.xlane.f32.xlu1 %v2332_v62  ;;  %v3392_v62 = vpop.eup %3391  ;;  %v3951_v63 = vor.u32 1056964608, %v1649_v10  ;;  %v1614_v1 = vshra.s32 %v1582_v22, 23  ;;  %v1805_v22 = vmul.f32 %v3832_v23, %v3832_v23  ;;  %vm1565_vm7 = vcmp.gt.f32.partialorder %v3716_v37, 0.0 }
  0x4f   :  { %v2333_v9 = vsel %vm2323_vm2, %v3891_v25, 0.0  ;;  %v1524_v30 = vmul.f32 0.6931472, %v3392_v62  ;;  %v1512_v20 = vsel %vm3878_vm0, %v1509_v51, %v1506_v43  ;;  %v1855_v0 = vmul.f32 %v3262_v5, %v3882_v32  ;;  %v3394_v45 = vpop.eup %3393 }
  0x50   :  { %v3915_v17 = vadd.f32 %v1512_v20, %v5007_v4  ;;  %v1774_v51 = vsel %vm1694_vm3, %v1758_v18, %v3884_v7  ;;  %v1542_v38 = vmul.f32 0.6931472, %v3394_v45  ;;  %v3214_v62 = vadd.s32 4294967170, %v1615_v47 }
  0x51   :  { %2358 = vadd.xlane.f32.xlu0 %v2333_v9  ;;  %v1871_v6 = vadd.f32 0.116769984, %v1855_v0  ;;  %v3949_v42 = vadd.f32 -1.0, %v1774_v51  ;;  %vm1697_vm5 = vcmp.lt.f32.partialorder %v3951_v63, 0.70710677  ;;  %v1725_v9 = vsel %vm1693_vm11, %v3228_v44, %v3212_v53 }
  0x52   :  { %2360 = vadd.xlane.f32.xlu1 %v3839_v35  ;;  %v1530_v35 = vsel %vm3893_vm1, %v1527_v31, %v1524_v30  ;;  %v2335_v36 = vsel %vm2323_vm2, %v3915_v17, 0.0  ;;  %v1548_v14 = vsel %vm3930_vm4, %v1545_v50, %v1542_v38  ;;  %v1761_v3 = vadd.f32 %v3951_v63, %v3951_v63 }
  0x53   :  { %v3922_v49 = vadd.f32 %v1530_v35, %v5008_v15  ;;  %v1887_v40 = vmul.f32 %v3882_v32, %v1871_v6  ;;  %v1822_v59 = vmul.f32 0.070376836, %v3949_v42  ;;  %v3960_v58 = vadd.f32 %v1548_v14, %v1340_v12 }
  0x54   :  { %v1584_v20 = vmax.f32 %v3794_v54, 1.1754944e-38  ;;  %v3230_v52 = vadd.s32 4294967295, %v3214_v62  ;;  %v1777_v4 = vsel %vm1697_vm5, %v1761_v3, %v3951_v63  ;;  %v1741_v6 = vcvt.s32.f32 %v1725_v9 }
  0x55   :  { %2362 = vadd.xlane.f32.xlu0 %v2335_v36  ;;  %v2337_v34 = vsel %vm2323_vm2, %v3922_v49, 0.0  ;;  %v3278_v2 = vadd.f32 -0.12420141, %v1887_v40  ;;  %v3261_v5 = vadd.f32 -0.1151461, %v1822_v59  ;;  %v2339_v0 = vsel %vm2323_vm2, %v3960_v58, 0.0 }
  0x56   :  { %2364 = vadd.xlane.f32.xlu1 %v2336_v29  ;;  %v1949_v29 = vmul.f32 %v3832_v23, %v1933_v27  ;;  %v1648_v35 = vand.u32 8388607, %v1584_v20  ;;  %v3981_v53 = vadd.f32 -1.0, %v1777_v4  ;;  %v3213_v55 = vadd.s32 4294967170, %v1614_v1 }
  0x57   :  { %v1919_v41 = vmul.f32 %v3278_v2, %v3882_v32  ;;  %v1854_v12 = vmul.f32 %v3261_v5, %v3949_v42  ;;  %v1727_v40 = vsel %vm1695_vm13, %v3230_v52, %v3214_v62  ;;  %v2141_v44 = vmul.f32 0.5, %v1805_v22 }
  0x58   :  { %v3292_v31 = vadd.f32 -0.16668057, %v1949_v29  ;;  %v3985_v36 = vor.u32 1056964608, %v1648_v35  ;;  %v1825_v50 = vmul.f32 0.070376836, %v3981_v53  ;;  %v1587_v5 = vmax.f32 %v3767_v57, 1.1754944e-38 }
  0x59   :  { %2366 = vadd.xlane.f32.xlu0 %v2337_v34  ;;  %v1935_v30 = vadd.f32 0.14249323, %v1919_v41  ;;  %v1870_v15 = vadd.f32 0.116769984, %v1854_v12  ;;  %v2109_v29 = vmul.f32 -0.00021219444, %v1741_v6 }
  0x5a   :  { %2368 = vadd.xlane.f32.xlu1 %v2338_v33  ;;  %v1981_v43 = vmul.f32 %v3292_v31, %v3832_v23  ;;  %vm1696_vm6 = vcmp.lt.f32.partialorder %v3985_v36, 0.70710677  ;;  %v1760_v10 = vadd.f32 %v3985_v36, %v3985_v36  ;;  %v3264_v34 = vadd.f32 -0.1151461, %v1825_v50 }
  0x5b   :  { %v1951_v39 = vmul.f32 %v3882_v32, %v1935_v30  ;;  %v1886_v47 = vmul.f32 %v3949_v42, %v1870_v15  ;;  %v1743_v31 = vcvt.s32.f32 %v1727_v40  ;;  %v3229_v41 = vadd.s32 4294967295, %v3213_v55 }
  0x5c   :  { %v1997_v19 = vadd.f32 0.20000714, %v1981_v43  ;;  %v1776_v2 = vsel %vm1696_vm6, %v1760_v10, %v3985_v36  ;;  %v1857_v14 = vmul.f32 %v3264_v34, %v3981_v53  ;;  %v2189_v30 = vmul.f32 0.6933594, %v1741_v6 }
  0x5d   :  { %2370 = vadd.xlane.f32.xlu0 %v2339_v0  ;;  %v3294_v18 = vadd.f32 -0.16668057, %v1951_v39  ;;  %v3277_v33 = vadd.f32 -0.12420141, %v1886_v47  ;;  %v4002_v43 = vadd.f32 -1.0, %v1776_v2  ;;  %v1807_v0 = vmul.f32 %v3882_v32, %v3882_v32 }
  0x5e   :  { %v2013_v28 = vmul.f32 %v3832_v23, %v1997_v19  ;;  %v1873_v19 = vadd.f32 0.116769984, %v1857_v14  ;;  %v1617_v12 = vshra.s32 %v1585_v8, 23  ;;  %v2111_v4 = vmul.f32 -0.00021219444, %v1743_v31 }
  0x5f   :  { %v1983_v51 = vmul.f32 %v3294_v18, %v3882_v32  ;;  %v1918_v59 = vmul.f32 %v3277_v33, %v3949_v42  ;;  %v1824_v52 = vmul.f32 0.070376836, %v4002_v43  ;;  %v4017_v6 = vsel %vm1694_vm3, %v3229_v41, %v3213_v55 }
  0x60   :  { %v3308_v27 = vadd.f32 -0.24999994, %v2013_v28  ;;  %v1889_v28 = vmul.f32 %v3981_v53, %v1873_v19  ;;  %v2143_v8 = vmul.f32 0.5, %v1807_v0  ;;  %v1742_v34 = vcvt.s32.f32 %v4017_v6 }
  0x61   :  { %v1999_v38 = vadd.f32 0.20000714, %v1983_v51  ;;  %v1934_v3 = vadd.f32 0.14249323, %v1918_v59  ;;  %v3263_v18 = vadd.f32 -0.1151461, %v1824_v52 }
  0x62   :  { %v2045_v45 = vmul.f32 %v3308_v27, %v3832_v23  ;;  %v1651_v27 = vand.u32 8388607, %v1587_v5  ;;  %v3280_v40 = vadd.f32 -0.12420141, %v1889_v28  ;;  %v3216_v51 = vadd.s32 4294967170, %v1617_v12 }
  0x63   :  { %v2015_v62 = vmul.f32 %v3882_v32, %v1999_v38  ;;  %v1950_v35 = vmul.f32 %v3949_v42, %v1934_v3  ;;  %v1856_v10 = vmul.f32 %v3263_v18, %v4002_v43  ;;  %vm1567_vm9 = vcmp.gt.f32.partialorder %v3740_v46, 0.0 }
  0x64   :  { %v2061_v24 = vadd.f32 0.3333333, %v2045_v45  ;;  %v4022_v45 = vor.u32 1056964608, %v1651_v27  ;;  %v1921_v55 = vmul.f32 %v3280_v40, %v3981_v53  ;;  %v2191_v59 = vmul.f32 0.6933594, %v1743_v31 }
  0x65   :  { %v3310_v1 = vadd.f32 -0.24999994, %v2015_v62  ;;  %v3293_v50 = vadd.f32 -0.16668057, %v1950_v35  ;;  %v1872_v2 = vadd.f32 0.116769984, %v1856_v10 }
  0x66   :  { %v2077_v9 = vmul.f32 %v3832_v23, %v2061_v24  ;;  %vm1699_vm8 = vcmp.lt.f32.partialorder %v4022_v45, 0.70710677  ;;  %v1937_v14 = vadd.f32 0.14249323, %v1921_v55  ;;  %v3232_v41 = vadd.s32 4294967295, %v3216_v51 }
  0x67   :  { %v2047_v15 = vmul.f32 %v3310_v1, %v3882_v32  ;;  %v1982_v7 = vmul.f32 %v3293_v50, %v3949_v42  ;;  %v2110_v31 = vmul.f32 -0.00021219444, %v1742_v34  ;;  %v1806_v50 = vmul.f32 %v3949_v42, %v3949_v42 }
  0x68   :  { %v2093_v39 = vmul.f32 %v2077_v9, %v1805_v22  ;;  %v1888_v9 = vmul.f32 %v4002_v43, %v1872_v2  ;;  %v1953_v12 = vmul.f32 %v3981_v53, %v1937_v14  ;;  %vm1566_vm11 = vcmp.gt.f32.partialorder %v3689_v16, 0.0 }
  0x69   :  { %v2063_v22 = vadd.f32 0.3333333, %v2047_v15  ;;  %vm1569_vm12 = vcmp.gt.f32.partialorder %v3721_v21, 0.0  ;;  %vm1568_vm13 = vcmp.gt.f32.partialorder %v3794_v54, 0.0 }
  0x6a   :  { %v2125_v47 = vadd.f32 %v2109_v29, %v2093_v39  ;;  %v1763_v29 = vadd.f32 %v4022_v45, %v4022_v45  ;;  %v3279_v39 = vadd.f32 -0.12420141, %v1888_v9  ;;  %v3296_v15 = vadd.f32 -0.16668057, %v1953_v12 }
  0x6b   :  { %v2079_v38 = vmul.f32 %v3882_v32, %v2063_v22  ;;  %v4057_v22 = vsel %vm1697_vm5, %v3232_v41, %v3216_v51  ;;  %v1619_v41 = vshra.s32 %v1587_v5, 23 }
  0x6c   :  { %v2157_v33 = vsub.f32 %v2125_v47, %v2141_v44  ;;  %v1998_v44 = vadd.f32 0.20000714, %v1982_v7  ;;  %v1779_v3 = vsel %vm1699_vm8, %v1763_v29, %v4022_v45 }
  0x6d   :  { %v2095_v62 = vmul.f32 %v2079_v38, %v1807_v0  ;;  %v4039_v52 = vadd.f32 -1.0, %v1779_v3  ;;  %v1586_v0 = vmax.f32 %v3798_v48, 1.1754944e-38  ;;  %v2142_v38 = vmul.f32 0.5, %v1806_v50 }
  0x6e   :  { %v2173_v24 = vadd.f32 %v3832_v23, %v2157_v33  ;;  %v2014_v1 = vmul.f32 %v3949_v42, %v1998_v44 }
  0x6f   :  { %v2127_v23 = vadd.f32 %v2111_v4, %v2095_v62  ;;  %v1920_v4 = vmul.f32 %v3279_v39, %v4002_v43  ;;  %v1827_v47 = vmul.f32 0.070376836, %v4039_v52  ;;  %v1650_v7 = vand.u32 8388607, %v1586_v0 }
  0x70   :  { %v2205_v19 = vadd.f32 %v2189_v30, %v2173_v24  ;;  %v3309_v28 = vadd.f32 -0.24999994, %v2014_v1  ;;  %v1616_v30 = vshra.s32 %v1584_v20, 23  ;;  %v1985_v20 = vmul.f32 %v3296_v15, %v3981_v53 }
  0x71   :  { %v2159_v27 = vsub.f32 %v2127_v23, %v2143_v8  ;;  %v1936_v33 = vadd.f32 0.14249323, %v1920_v4  ;;  %v3266_v8 = vadd.f32 -0.1151461, %v1827_v47  ;;  %v4065_v51 = vor.u32 1056964608, %v1650_v7 }
  0x72   :  { %v2221_v35 = vsel %vm1565_vm7, %v2205_v19, -inf  ;;  %v2046_v40 = vmul.f32 %v3309_v28, %v3949_v42  ;;  %v2001_v2 = vadd.f32 0.20000714, %v1985_v20  ;;  %v3215_v29 = vadd.s32 4294967170, %v1616_v30 }
  0x73   :  { %v2372_v18 = vsel %vm2323_vm2, %v2221_v35, 0.0  ;;  %v2175_v10 = vadd.f32 %v3882_v32, %v2159_v27  ;;  %v1952_v44 = vmul.f32 %v4002_v43, %v1936_v33  ;;  %v1859_v63 = vmul.f32 %v3266_v8, %v4039_v52 }
  0x74   :  { %2388 = vadd.xlane.f32.xlu1 %v2372_v18  ;;  %v2062_v55 = vadd.f32 0.3333333, %v2046_v40  ;;  %v1745_v32 = vcvt.s32.f32 %v4057_v22  ;;  %v2017_v62 = vmul.f32 %v3981_v53, %v2001_v2  ;;  %v1762_v19 = vadd.f32 %v4065_v51, %v4065_v51 }
  0x75   :  { %v2207_v24 = vadd.f32 %v2191_v59, %v2175_v10  ;;  %v3295_v3 = vadd.f32 -0.16668057, %v1952_v44  ;;  %v1875_v59 = vadd.f32 0.116769984, %v1859_v63  ;;  %vm1698_vm10 = vcmp.lt.f32.partialorder %v4065_v51, 0.70710677 }
  0x76   :  { %v2078_v14 = vmul.f32 %v3949_v42, %v2062_v55  ;;  %v3312_v23 = vadd.f32 -0.24999994, %v2017_v62  ;;  %v3231_v39 = vadd.s32 4294967295, %v3215_v29  ;;  %v1778_v28 = vsel %vm1698_vm10, %v1762_v19, %v4065_v51 }
  0x77   :  { %v2223_v9 = vsel %vm1567_vm9, %v2207_v24, -inf  ;;  %v1984_v35 = vmul.f32 %v3295_v3, %v4002_v43  ;;  %v1891_v5 = vmul.f32 %v4039_v52, %v1875_v59  ;;  %v4085_v18 = vadd.f32 -1.0, %v1778_v28 }
  0x78   :  { %v2374_v1 = vsel %vm2323_vm2, %v2223_v9, 0.0  ;;  %v2094_v12 = vmul.f32 %v2078_v14, %v1806_v50  ;;  %v2049_v30 = vmul.f32 %v3312_v23, %v3981_v53  ;;  %v2190_v27 = vmul.f32 0.6933594, %v1742_v34 }
  0x79   :  { %2392 = vadd.xlane.f32.xlu1 %v2374_v1  ;;  %v1809_v4 = vmul.f32 %v3981_v53, %v3981_v53  ;;  %v2000_v47 = vadd.f32 0.20000714, %v1984_v35  ;;  %v3282_v50 = vadd.f32 -0.12420141, %v1891_v5  ;;  %v3218_v20 = vadd.s32 4294967170, %v1619_v41 }
  0x7a   :  { %v2126_v15 = vadd.f32 %v2110_v31, %v2094_v12  ;;  %v2065_v22 = vadd.f32 0.3333333, %v2049_v30  ;;  %v1826_v10 = vmul.f32 0.070376836, %v4085_v18  ;;  %v2113_v33 = vmul.f32 -0.00021219444, %v1745_v32 }
  0x7b   :  { %v1728_v31 = vsel %vm1696_vm6, %v3231_v39, %v3215_v29  ;;  %v2016_v8 = vmul.f32 %v4002_v43, %v2000_v47  ;;  %v1923_v7 = vmul.f32 %v3282_v50, %v4039_v52  ;;  %v2145_v24 = vmul.f32 0.5, %v1809_v4 }
  0x7c   :  { %v2158_v40 = vsub.f32 %v2126_v15, %v2142_v38  ;;  %v2081_v34 = vmul.f32 %v3981_v53, %v2065_v22  ;;  %v3265_v2 = vadd.f32 -0.1151461, %v1826_v10  ;;  %v1589_v38 = vmax.f32 %v3780_v13, 1.1754944e-38 }
  0x7d   :  { %v3311_v44 = vadd.f32 -0.24999994, %v2016_v8  ;;  %v1939_v63 = vadd.f32 0.14249323, %v1923_v7  ;;  %v3234_v62 = vadd.s32 4294967295, %v3218_v20  ;;  %v1744_v41 = vcvt.s32.f32 %v1728_v31 }
  0x7e   :  { %v2174_v6 = vadd.f32 %v3949_v42, %v2158_v40  ;;  %v2097_v29 = vmul.f32 %v2081_v34, %v1809_v4  ;;  %v1618_v42 = vshra.s32 %v1586_v0, 23  ;;  %v1858_v59 = vmul.f32 %v3265_v2, %v4085_v18 }
  0x7f   :  { %v2048_v9 = vmul.f32 %v3311_v44, %v4002_v43  ;;  %v1955_v3 = vmul.f32 %v4039_v52, %v1939_v63  ;;  %v1653_v23 = vand.u32 8388607, %v1589_v38  ;;  %v2193_v35 = vmul.f32 0.6933594, %v1745_v32 }
  0x80   :  { %v2206_v36 = vadd.f32 %v2190_v27, %v2174_v6  ;;  %v2129_v1 = vadd.f32 %v2113_v33, %v2097_v29  ;;  %v1808_v0 = vmul.f32 %v4002_v43, %v4002_v43  ;;  %v1731_v15 = vsel %vm1699_vm8, %v3234_v62, %v3218_v20 }
  0x81   :  { %v4098_v55 = vpop.permute.xlu0 %2258  ;;  %v4102_v14 = vpop.permute.xlu1 %2264  ;;  %v2064_v5 = vadd.f32 0.3333333, %v2048_v9  ;;  %v3298_v30 = vadd.f32 -0.16668057, %v1955_v3  ;;  %v3217_v27 = vadd.s32 4294967170, %v1618_v42  ;;  %v4119_v40 = vor.u32 1056964608, %v1653_v23 }
  0x82   :  { %v2222_v19 = vsel %vm1566_vm11, %v2206_v36, -inf  ;;  %v2161_v28 = vsub.f32 %v2129_v1, %v2145_v24  ;;  %v2112_v47 = vmul.f32 -0.00021219444, %v1744_v41  ;;  %v1874_v50 = vadd.f32 0.116769984, %v1858_v59 }
  0x83   :  { %v2373_v39 = vsel %vm2323_vm2, %v2222_v19, 0.0  ;;  %v2080_v4 = vmul.f32 %v4002_v43, %v2064_v5  ;;  %v2192_v32 = vmul.f32 0.6933594, %v1744_v41  ;;  %v1987_v45 = vmul.f32 %v3298_v30, %v4039_v52 }
  0x84   :  { %2390 = vadd.xlane.f32.xlu0 %v2373_v39  ;;  %v2177_v22 = vadd.f32 %v3981_v53, %v2161_v28  ;;  %v2144_v31 = vmul.f32 0.5, %v1808_v0  ;;  %v1747_v8 = vcvt.s32.f32 %v1731_v15  ;;  %v1890_v7 = vmul.f32 %v4085_v18, %v1874_v50 }
  0x85   :  { %v4110_v12 = vpop.permute.xlu0 %2261  ;;  %v4123_v10 = vpop.permute.xlu1 %2267  ;;  %v2096_v20 = vmul.f32 %v2080_v4, %v1808_v0  ;;  %v2003_v34 = vadd.f32 0.20000714, %v1987_v45  ;;  %v3233_v2 = vadd.s32 4294967295, %v3217_v27  ;;  %v1588_v24 = vmax.f32 %v3843_v26, 1.1754944e-38 }
  0x86   :  { %v2209_v6 = vadd.f32 %v2193_v35, %v2177_v22  ;;  %v3281_v44 = vadd.f32 -0.12420141, %v1890_v7  ;;  %v1621_v63 = vshra.s32 %v1589_v38, 23  ;;  %v1765_v36 = vadd.f32 %v4119_v40, %v4119_v40 }
  0x87   :  { %v2128_v53 = vadd.f32 %v2112_v47, %v2096_v20  ;;  %vm2305_vm14 = vcmp.eq.s32.totalorder %v3560_v60, %v4098_v55  ;;  %v2019_v42 = vmul.f32 %v4039_v52, %v2003_v34  ;;  %vm1701_vm15 = vcmp.lt.f32.partialorder %v4119_v40, 0.70710677 }
  0x88   :  { %v2225_v29 = vsel %vm1569_vm12, %v2209_v6, -inf  ;;  %v1811_v38 = vmul.f32 %v4039_v52, %v4039_v52  ;;  %v2115_v3 = vmul.f32 -0.00021219444, %v1747_v8  ;;  %v1730_v55 = vsel %vm1698_vm10, %v3233_v2, %v3217_v27 }
  0x89   :  { %v4125_v33 = vpop.permute.xlu0 %2270  ;;  %v2376_v41 = vsel %vm2323_vm2, %v2225_v29, 0.0  ;;  %v2160_v9 = vsub.f32 %v2128_v53, %v2144_v31  ;;  %v4144_v59 = vpop.permute.xlu1 %2273  ;;  %v3314_v19 = vadd.f32 -0.24999994, %v2019_v42  ;;  %v1922_v1 = vmul.f32 %v3281_v44, %v4085_v18 }
  0x8a   :  { %2396 = vadd.xlane.f32.xlu1 %v2376_v41  ;;  %v1652_v23 = vand.u32 8388607, %v1588_v24  ;;  %v2420_v35 = vsel %vm2305_vm14, %v3716_v37, 0.0  ;;  %v3220_v0 = vadd.s32 4294967170, %v1621_v63  ;;  %v1781_v5 = vsel %vm1701_vm15, %v1765_v36, %v4119_v40 }
  0x8b   :  { %v2176_v39 = vadd.f32 %v4002_v43, %v2160_v9  ;;  %vm2307_vm0 = vcmp.eq.s32.totalorder %v3560_v60, %v4102_v14  ;;  %v2051_v51 = vmul.f32 %v3314_v19, %v4039_v52  ;;  %v1938_v15 = vadd.f32 0.14249323, %v1922_v1 }
  0x8c   :  { %v4159_v30 = vadd.f32 -1.0, %v1781_v5  ;;  %v4161_v4 = vmul.f32 0.5, %v1811_v38  ;;  %v4163_v43 = vmul.f32 0.6933594, %v1747_v8  ;;  %v1746_v37 = vcvt.s32.f32 %v1730_v55 }
  0x8d   :  { %v4136_v62 = vpop.permute.xlu0 %2276  ;;  %v2208_v27 = vadd.f32 %v2192_v32, %v2176_v39  ;;  %vm2306_vm1 = vcmp.eq.s32.totalorder %v3560_v60, %v4110_v12  ;;  %v2067_v47 = vadd.f32 0.3333333, %v2051_v51  ;;  %v1954_v14 = vmul.f32 %v4085_v18, %v1938_v15  ;;  %v2280_v12 = vpop.permute.xlu1 %2279 }
  0x8e   :  { %2436 = vadd.xlane.f32.xlu1 %v2420_v35  ;;  %v4168_v50 = vor.u32 1056964608, %v1652_v23  ;;  %v2422_v45 = vsel %vm2307_vm0, %v3740_v46, 0.0  ;;  %v3236_v32 = vadd.s32 4294967295, %v3220_v0  ;;  %v1829_v20 = vmul.f32 0.070376836, %v4159_v30 }
  0x8f   :  { %v2224_v22 = vsel %vm1568_vm13, %v2208_v27, -inf  ;;  %vm2309_vm3 = vcmp.eq.s32.totalorder %v3560_v60, %v4125_v33  ;;  %v2083_v8 = vmul.f32 %v4039_v52, %v2067_v47  ;;  %v3297_v7 = vadd.f32 -0.16668057, %v1954_v14 }
  0x90   :  { %v2375_v31 = vsel %vm2323_vm2, %v2224_v22, 0.0  ;;  %v2421_v6 = vsel %vm2306_vm1, %v3689_v16, 0.0  ;;  %v4182_v34 = vmul.f32 %v4085_v18, %v4085_v18  ;;  %v4184_v46 = vmul.f32 -0.00021219444, %v1746_v37 }
  0x91   :  { %v4156_v28 = vpop.permute.xlu0 %2282  ;;  %2394 = vadd.xlane.f32.xlu0 %v2375_v31  ;;  %v3268_v2 = vadd.f32 -0.1151461, %v1829_v20  ;;  %v2099_v44 = vmul.f32 %v2083_v8, %v1811_v38  ;;  %v1986_v33 = vmul.f32 %v3297_v7, %v4085_v18  ;;  %v1620_v63 = vshra.s32 %v1588_v24, 23 }
  0x92   :  { %2440 = vadd.xlane.f32.xlu1 %v2422_v45  ;;  %vm1700_vm4 = vcmp.lt.f32.partialorder %v4168_v50, 0.70710677  ;;  %v2424_v36 = vsel %vm2309_vm3, %v3721_v21, 0.0  ;;  %v4191_v29 = vmul.f32 0.6933594, %v1746_v37  ;;  %v1764_v42 = vadd.f32 %v4168_v50, %v4168_v50 }
  0x93   :  { %v1861_v16 = vmul.f32 %v3268_v2, %v4159_v30  ;;  %vm2311_vm5 = vcmp.eq.s32.totalorder %v3560_v60, %v4136_v62  ;;  %v2002_v41 = vadd.f32 0.20000714, %v1986_v33  ;;  %v1733_v9 = vsel %vm1701_vm15, %v3236_v32, %v3220_v0  ;;  %v2286_v62 = vpop.permute.xlu1 %2285 }
  0x94   :  { %v1591_v24 = vmax.f32 %v3815_v56, 1.1754944e-38  ;;  %vm2308_vm6 = vcmp.eq.s32.totalorder %v3560_v60, %v4123_v10  ;;  %vm2310_vm7 = vcmp.eq.s32.totalorder %v3560_v60, %v4144_v59  ;;  %v1780_v38 = vsel %vm1700_vm4, %v1764_v42, %v4168_v50 }
  0x95   :  { %v4186_v53 = vpop.permute.xlu0 %2288  ;;  %2438 = vadd.xlane.f32.xlu0 %v2421_v6  ;;  %v1877_v21 = vadd.f32 0.116769984, %v1861_v16  ;;  %vm2312_vm8 = vcmp.eq.s32.totalorder %v3560_v60, %v2280_v12  ;;  %v2131_v40 = vadd.f32 %v2115_v3, %v2099_v44  ;;  %v2018_v19 = vmul.f32 %v4085_v18, %v2002_v41 }
  0x96   :  { %2444 = vadd.xlane.f32.xlu1 %v2424_v36  ;;  %v4210_v55 = vadd.s32 4294967170, %v1620_v63  ;;  %v2426_v1 = vsel %vm2311_vm5, %v3767_v57, 0.0  ;;  %v1749_v10 = vcvt.s32.f32 %v1733_v9  ;;  %v4214_v39 = vadd.f32 -1.0, %v1780_v38 }
  0x97   :  { %v1893_v23 = vmul.f32 %v4159_v30, %v1877_v21  ;;  %v2423_v35 = vsel %vm2308_vm6, %v3794_v54, 0.0  ;;  %vm2313_vm9 = vcmp.eq.s32.totalorder %v3560_v60, %v4156_v28  ;;  %v3313_v5 = vadd.f32 -0.24999994, %v2018_v19  ;;  %v2292_v31 = vpop.permute.xlu1 %2291 }
  0x98   :  { %v1655_v3 = vand.u32 8388607, %v1591_v24  ;;  %v2425_v51 = vsel %vm2310_vm7, %v3798_v48, 0.0  ;;  %vm2314_vm10 = vcmp.eq.s32.totalorder %v3560_v60, %v2286_v62  ;;  %v4227_v15 = vmul.f32 0.5, %v4182_v34 }
  0x99   :  { %v2295_v0 = vpop.permute.xlu0 %2294  ;;  %2442 = vadd.xlane.f32.xlu0 %v2423_v35  ;;  %v3284_v54 = vadd.f32 -0.12420141, %v1893_v23  ;;  %v2427_v28 = vsel %vm2312_vm8, %v3843_v26, 0.0  ;;  %v2163_v27 = vsub.f32 %v2131_v40, %v4161_v4  ;;  %v2050_v37 = vmul.f32 %v3313_v5, %v4085_v18 }
  0x9a   :  { %2448 = vadd.xlane.f32.xlu1 %v2426_v1  ;;  %v3235_v47 = vadd.s32 4294967295, %v4210_v55  ;;  %v2428_v59 = vsel %vm2313_vm9, %v3780_v13, 0.0  ;;  %vm1571_vm11 = vcmp.gt.f32.partialorder %v3767_v57, 0.0  ;;  %v4238_v22 = vmul.f32 -0.00021219444, %v1749_v10 }
  0x9b   :  { %v1925_v14 = vmul.f32 %v3284_v54, %v4159_v30  ;;  %v1828_v45 = vmul.f32 0.070376836, %v4214_v39  ;;  %v2429_v32 = vsel %vm2314_vm10, %v3891_v25, 0.0  ;;  %vm2315_vm12 = vcmp.eq.s32.totalorder %v3560_v60, %v4186_v53 }
  0x9c   :  { %v2066_v4 = vadd.f32 0.3333333, %v2050_v37  ;;  %v4244_v20 = vor.u32 1056964608, %v1655_v3  ;;  %v4248_v12 = vmul.f32 %v4159_v30, %v4159_v30  ;;  %v4250_v7 = vmul.f32 0.6933594, %v1749_v10 }
  0x9d   :  { %2446 = vadd.xlane.f32.xlu0 %v2425_v51  ;;  %v1941_v8 = vadd.f32 0.14249323, %v1925_v14  ;;  %v3267_v6 = vadd.f32 -0.1151461, %v1828_v45  ;;  %v2301_v2 = vpop.permute.xlu0 %2300  ;;  %v2179_v44 = vadd.f32 %v4039_v52, %v2163_v27  ;;  %v2430_v63 = vsel %vm2315_vm12, %v3815_v56, 0.0 }
  0x9e   :  { %2452 = vadd.xlane.f32.xlu1 %v2428_v59  ;;  %v2082_v33 = vmul.f32 %v4085_v18, %v2066_v4  ;;  %vm1703_vm13 = vcmp.lt.f32.partialorder %v4244_v20, 0.70710677  ;;  %v1767_v53 = vadd.f32 %v4244_v20, %v4244_v20  ;;  %vm2317_vm14 = vcmp.eq.s32.totalorder %v3560_v60, %v2295_v0  ;;  %v2298_v0 = vpop.permute.xlu1 %2297 }
  0x9f   :  { %v1957_v36 = vmul.f32 %v4159_v30, %v1941_v8  ;;  %v1860_v16 = vmul.f32 %v3267_v6, %v4214_v39  ;;  %vm2316_vm15 = vcmp.eq.s32.totalorder %v3560_v60, %v2292_v31  ;;  %v1590_v41 = vmax.f32 %v3891_v25, 1.1754944e-38 }
  0xa0   :  { %v2098_v42 = vmul.f32 %v2082_v33, %v4182_v34  ;;  %v1783_v52 = vsel %vm1703_vm13, %v1767_v53, %v4244_v20  ;;  %vm2319_vm0 = vcmp.eq.s32.totalorder %v3560_v60, %v2301_v2  ;;  %v2432_v62 = vsel %vm2317_vm14, %v3847_v61, 0.0 }
  0xa1   :  { %2450 = vadd.xlane.f32.xlu0 %v2427_v28  ;;  %v3300_v9 = vadd.f32 -0.16668057, %v1957_v36  ;;  %v1876_v21 = vadd.f32 0.116769984, %v1860_v16  ;;  %v4268_v38 = vadd.f32 -1.0, %v1783_v52  ;;  %v2211_v40 = vadd.f32 %v4163_v43, %v2179_v44 }
  0xa2   :  { %2456 = vadd.xlane.f32.xlu1 %v2430_v63  ;;  %v2130_v34 = vadd.f32 %v4184_v46, %v2098_v42  ;;  %v1623_v19 = vshra.s32 %v1591_v24, 23  ;;  %v1593_v35 = vmax.f32 %v3847_v61, 1.1754944e-38  ;;  %v2434_v5 = vsel %vm2319_vm0, %v3911_v11, 0.0  ;;  %v2304_v6 = vpop.permute.xlu1 %2303 }
  0xa3   :  { %v1989_v1 = vmul.f32 %v3300_v9, %v4159_v30  ;;  %v1892_v10 = vmul.f32 %v4214_v39, %v1876_v21  ;;  %v1831_v23 = vmul.f32 0.070376836, %v4268_v38  ;;  %vm1570_vm1 = vcmp.gt.f32.partialorder %v3798_v48, 0.0 }
  0xa4   :  { %v2162_v43 = vsub.f32 %v2130_v34, %v4227_v15  ;;  %v4283_v46 = vmul.f32 0.5, %v4248_v12  ;;  %v1654_v3 = vand.u32 8388607, %v1590_v41  ;;  %v4288_v51 = vsel %vm1700_vm4, %v3235_v47, %v4210_v55 }
  0xa5   :  { %2454 = vadd.xlane.f32.xlu0 %v2429_v32  ;;  %v2005_v24 = vadd.f32 0.20000714, %v1989_v1  ;;  %v3283_v54 = vadd.f32 -0.12420141, %v1892_v10  ;;  %v3270_v28 = vadd.f32 -0.1151461, %v1831_v23  ;;  %v1748_v57 = vcvt.s32.f32 %v4288_v51 }
  0xa6   :  { %2460 = vadd.xlane.f32.xlu1 %v2432_v62  ;;  %v2227_v27 = vsel %vm1571_vm11, %v2211_v40, -inf  ;;  %v2178_v37 = vadd.f32 %v4085_v18, %v2162_v43  ;;  %v3222_v15 = vadd.s32 4294967170, %v1623_v19  ;;  %v4293_v59 = vor.u32 1056964608, %v1654_v3 }
  0xa7   :  { %v2021_v14 = vmul.f32 %v4159_v30, %v2005_v24  ;;  %v1924_v45 = vmul.f32 %v3283_v54, %v4214_v39  ;;  %v1863_v32 = vmul.f32 %v3270_v28, %v4268_v38  ;;  %v1657_v50 = vand.u32 8388607, %v1593_v35 }
  0xa8   :  { %v2431_v55 = vsel %vm2316_vm15, %v3915_v17, 0.0  ;;  %vm1702_vm3 = vcmp.lt.f32.partialorder %v4293_v59, 0.70710677  ;;  %v1766_v18 = vadd.f32 %v4293_v59, %v4293_v59  ;;  %vm2318_vm4 = vcmp.eq.s32.totalorder %v3560_v60, %v2298_v0 }
  0xa9   :  { %2458 = vadd.xlane.f32.xlu0 %v2431_v55  ;;  %v3316_v47 = vadd.f32 -0.24999994, %v2021_v14  ;;  %v1940_v4 = vadd.f32 0.14249323, %v1924_v45  ;;  %v1879_v8 = vadd.f32 0.116769984, %v1863_v32  ;;  %v2210_v53 = vadd.f32 %v4191_v29, %v2178_v37 }
  0xaa   :  { %2464 = vadd.xlane.f32.xlu1 %v2434_v5  ;;  %v2378_v2 = vsel %vm2323_vm2, %v2227_v27, 0.0  ;;  %v3238_v31 = vadd.s32 4294967295, %v3222_v15  ;;  %v1782_v44 = vsel %vm1702_vm3, %v1766_v18, %v4293_v59  ;;  %v4313_v33 = vor.u32 1056964608, %v1657_v50 }
  0xab   :  { %v2053_v63 = vmul.f32 %v3316_v47, %v4159_v30  ;;  %v1956_v36 = vmul.f32 %v4214_v39, %v1940_v4  ;;  %v1895_v16 = vmul.f32 %v4268_v38, %v1879_v8  ;;  %v2433_v42 = vsel %vm2318_vm4, %v3922_v49, 0.0 }
  0xac   :  { %v1622_v52 = vshra.s32 %v1590_v41, 23  ;;  %v4320_v9 = vadd.f32 -1.0, %v1782_v44  ;;  %vm1705_vm5 = vcmp.lt.f32.partialorder %v4313_v33, 0.70710677  ;;  %vm2320_vm6 = vcmp.eq.s32.totalorder %v3560_v60, %v2304_v6 }
  0xad   :  { %2462 = vadd.xlane.f32.xlu0 %v2433_v42  ;;  %v2069_v21 = vadd.f32 0.3333333, %v2053_v63  ;;  %v3299_v62 = vadd.f32 -0.16668057, %v1956_v36  ;;  %v3286_v40 = vadd.f32 -0.12420141, %v1895_v16  ;;  %v4328_v34 = vsel %vm1703_vm13, %v3238_v31, %v3222_v15 }
  0xae   :  { %2400 = vadd.xlane.f32.xlu1 %v2378_v2  ;;  %v4324_v29 = vmul.f32 -0.00021219444, %v1748_v57  ;;  %v1830_v19 = vmul.f32 0.070376836, %v4320_v9  ;;  %v1769_v41 = vadd.f32 %v4313_v33, %v4313_v33  ;;  %v2226_v1 = vsel %vm1570_vm1, %v2210_v53, -inf }
  0xaf   :  { %v2085_v10 = vmul.f32 %v4159_v30, %v2069_v21  ;;  %v1988_v23 = vmul.f32 %v3299_v62, %v4214_v39  ;;  %v1927_v0 = vmul.f32 %v3286_v40, %v4268_v38  ;;  %v2435_v5 = vsel %vm2320_vm6, %v3960_v58, 0.0 }
  0xb0   :  { %vm1573_vm7 = vcmp.gt.f32.partialorder %v3780_v13, 0.0  ;;  %v3221_v20 = vadd.s32 4294967170, %v1622_v52  ;;  %v3269_v43 = vadd.f32 -0.1151461, %v1830_v19  ;;  %v1785_v3 = vsel %vm1705_vm5, %v1769_v41, %v4313_v33 }
  0xb1   :  { %2466 = vadd.xlane.f32.xlu0 %v2435_v5  ;;  %v2101_v48 = vmul.f32 %v2085_v10, %v4248_v12  ;;  %v2004_v24 = vadd.f32 0.20000714, %v1988_v23  ;;  %v1943_v51 = vadd.f32 0.14249323, %v1927_v0  ;;  %v4344_v54 = vadd.f32 -1.0, %v1785_v3 }
  0xb2   :  { %v2377_v28 = vsel %vm2323_vm2, %v2226_v1, 0.0  ;;  %v1751_v27 = vcvt.s32.f32 %v4328_v34  ;;  %v1862_v37 = vmul.f32 %v3269_v43, %v4320_v9  ;;  %v1592_v15 = vmax.f32 %v3915_v17, 1.1754944e-38 }
  0xb3   :  { %v2133_v14 = vadd.f32 %v4238_v22, %v2101_v48  ;;  %v1812_v45 = vmul.f32 %v4214_v39, %v4214_v39  ;;  %v2020_v12 = vmul.f32 %v4214_v39, %v2004_v24  ;;  %v1959_v32 = vmul.f32 %v4268_v38, %v1943_v51 }
  0xb4   :  { %v4356_v50 = vmul.f32 0.6933594, %v1748_v57  ;;  %v3237_v55 = vadd.s32 4294967295, %v3221_v20  ;;  %v1878_v18 = vadd.f32 0.116769984, %v1862_v37  ;;  %v1833_v47 = vmul.f32 0.070376836, %v4344_v54 }
  0xb5   :  { %2398 = vadd.xlane.f32.xlu0 %v2377_v28  ;;  %v2165_v4 = vsub.f32 %v2133_v14, %v4283_v46  ;;  %v3315_v8 = vadd.f32 -0.24999994, %v2020_v12  ;;  %v2148_v6 = vmul.f32 0.5, %v1812_v45  ;;  %v3302_v2 = vadd.f32 -0.16668057, %v1959_v32 }
  0xb6   :  { %v4360_v22 = vmul.f32 -0.00021219444, %v1751_v27  ;;  %v1894_v31 = vmul.f32 %v4320_v9, %v1878_v18  ;;  %v3272_v44 = vadd.f32 -0.1151461, %v1833_v47  ;;  %v1656_v53 = vand.u32 8388607, %v1592_v15 }
  0xb7   :  { %v2181_v57 = vadd.f32 %v4159_v30, %v2165_v4  ;;  %v2052_v63 = vmul.f32 %v3315_v8, %v4214_v39  ;;  %v1991_v36 = vmul.f32 %v3302_v2, %v4268_v38  ;;  %v1625_v46 = vshra.s32 %v1593_v35, 23 }
  0xb8   :  { %v4372_v16 = vsel %vm1702_vm3, %v3237_v55, %v3221_v20  ;;  %v3285_v42 = vadd.f32 -0.12420141, %v1894_v31  ;;  %v1865_v52 = vmul.f32 %v3272_v44, %v4344_v54  ;;  %v4375_v21 = vor.u32 1056964608, %v1656_v53 }
  0xb9   :  { %v2213_v62 = vadd.f32 %v4250_v7, %v2181_v57  ;;  %v2068_v40 = vadd.f32 0.3333333, %v2052_v63  ;;  %v2007_v30 = vadd.f32 0.20000714, %v1991_v36  ;;  %v1595_v34 = vmax.f32 %v3911_v11, 1.1754944e-38 }
  0xba   :  { %v1926_v19 = vmul.f32 %v3285_v42, %v4320_v9  ;;  %v1881_v41 = vadd.f32 0.116769984, %v1865_v52  ;;  %vm1704_vm8 = vcmp.lt.f32.partialorder %v4375_v21, 0.70710677  ;;  %v1768_v35 = vadd.f32 %v4375_v21, %v4375_v21 }
  0xbb   :  { %v2229_v59 = vsel %vm1573_vm7, %v2213_v62, -inf  ;;  %v2084_v1 = vmul.f32 %v4214_v39, %v2068_v40  ;;  %v2023_v10 = vmul.f32 %v4268_v38, %v2007_v30  ;;  %v3224_v7 = vadd.s32 4294967170, %v1625_v46 }
  0xbc   :  { %v2380_v23 = vsel %vm2323_vm2, %v2229_v59, 0.0  ;;  %vm1572_vm9 = vcmp.gt.f32.partialorder %v3843_v26, 0.0  ;;  %v1750_v0 = vcvt.s32.f32 %v4372_v16  ;;  %v1942_v5 = vadd.f32 0.14249323, %v1926_v19 }
  0xbd   :  { %v1897_v20 = vmul.f32 %v4344_v54, %v1881_v41  ;;  %2404 = vadd.xlane.f32.xlu1 %v2380_v23  ;;  %v2100_v43 = vmul.f32 %v2084_v1, %v1812_v45  ;;  %v3318_v3 = vadd.f32 -0.24999994, %v2023_v10  ;;  %v1784_v13 = vsel %vm1704_vm8, %v1768_v35, %v4375_v21 }
  0xbe   :  { %v1659_v48 = vand.u32 8388607, %v1595_v34  ;;  %v4397_v24 = vmul.f32 0.6933594, %v1751_v27  ;;  %v1958_v51 = vmul.f32 %v4320_v9, %v1942_v5  ;;  %v4400_v37 = vadd.f32 -1.0, %v1784_v13 }
  0xbf   :  { %v3288_v28 = vadd.f32 -0.12420141, %v1897_v20  ;;  %v2132_v14 = vadd.f32 %v4324_v29, %v2100_v43  ;;  %v1815_v45 = vmul.f32 %v4268_v38, %v4268_v38  ;;  %v2055_v12 = vmul.f32 %v3318_v3, %v4268_v38 }
  0xc0   :  { %v4406_v32 = vor.u32 1056964608, %v1659_v48  ;;  %v3301_v55 = vadd.f32 -0.16668057, %v1958_v51  ;;  %v3240_v18 = vadd.s32 4294967295, %v3224_v7  ;;  %v1832_v27 = vmul.f32 0.070376836, %v4400_v37 }
  0xc1   :  { %v1929_v47 = vmul.f32 %v3288_v28, %v4344_v54  ;;  %v2164_v4 = vsub.f32 %v2132_v14, %v2148_v6  ;;  %v2071_v8 = vadd.f32 0.3333333, %v2055_v12  ;;  %v2151_v2 = vmul.f32 0.5, %v1815_v45 }
  0xc2   :  { %v4410_v31 = vmul.f32 -0.00021219444, %v1750_v0  ;;  %v1990_v29 = vmul.f32 %v3301_v55, %v4320_v9  ;;  %v3271_v53 = vadd.f32 -0.1151461, %v1832_v27  ;;  %vm1707_vm10 = vcmp.lt.f32.partialorder %v4406_v32, 0.70710677 }
  0xc3   :  { %v1945_v44 = vadd.f32 0.14249323, %v1929_v47  ;;  %v2180_v57 = vadd.f32 %v4214_v39, %v2164_v4  ;;  %v2087_v63 = vmul.f32 %v4268_v38, %v2071_v8  ;;  %v1624_v36 = vshra.s32 %v1592_v15, 23 }
  0xc4   :  { %v1771_v6 = vadd.f32 %v4406_v32, %v4406_v32  ;;  %vm1575_vm11 = vcmp.gt.f32.partialorder %v3815_v56, 0.0  ;;  %v2006_v46 = vadd.f32 0.20000714, %v1990_v29  ;;  %v4423_v16 = vsel %vm1705_vm5, %v3240_v18, %v3224_v7 }
  0xc5   :  { %v1961_v42 = vmul.f32 %v4344_v54, %v1945_v44  ;;  %v1864_v52 = vmul.f32 %v3271_v53, %v4400_v37  ;;  %v2212_v39 = vadd.f32 %v4356_v50, %v2180_v57  ;;  %v2103_v62 = vmul.f32 %v2087_v63, %v1815_v45 }
  0xc6   :  { %v1814_v15 = vmul.f32 %v4320_v9, %v4320_v9  ;;  %v1787_v40 = vsel %vm1707_vm10, %v1771_v6, %v4406_v32  ;;  %v2022_v33 = vmul.f32 %v4320_v9, %v2006_v46  ;;  %v1753_v1 = vcvt.s32.f32 %v4423_v16 }
  0xc7   :  { %v3304_v19 = vadd.f32 -0.16668057, %v1961_v42  ;;  %v1880_v41 = vadd.f32 0.116769984, %v1864_v52  ;;  %v4436_v35 = vadd.f32 -1.0, %v1787_v40  ;;  %v2228_v59 = vsel %vm1572_vm9, %v2212_v39, -inf }
  0xc8   :  { %v2135_v50 = vadd.f32 %v4360_v22, %v2103_v62  ;;  %v3223_v10 = vadd.s32 4294967170, %v1624_v36  ;;  %v2379_v7 = vsel %vm2323_vm2, %v2228_v59, 0.0  ;;  %v3317_v23 = vadd.f32 -0.24999994, %v2022_v33 }
  0xc9   :  { %v1993_v5 = vmul.f32 %v3304_v19, %v4344_v54  ;;  %v1896_v20 = vmul.f32 %v4400_v37, %v1880_v41  ;;  %2402 = vadd.xlane.f32.xlu0 %v2379_v7  ;;  %v4446_v3 = vmul.f32 0.6933594, %v1750_v0  ;;  %v1835_v26 = vmul.f32 0.070376836, %v4436_v35 }
  0xca   :  { %v4433_v30 = vpop.xlane.xlu0 %2340  ;;  %v2167_v43 = vsub.f32 %v2135_v50, %v2151_v2  ;;  %v1594_v13 = vmax.f32 %v3922_v49, 1.1754944e-38  ;;  %v2054_v48 = vmul.f32 %v3317_v23, %v4320_v9  ;;  %v2150_v51 = vmul.f32 0.5, %v1814_v15 }
  0xcb   :  { %v2009_v28 = vadd.f32 0.20000714, %v1993_v5  ;;  %v3287_v14 = vadd.f32 -0.12420141, %v1896_v20  ;;  %v2121_v55 = vmul.f32 -0.00021219444, %v1753_v1  ;;  %v1817_v29 = vmul.f32 %v4344_v54, %v4344_v54 }
  0xcc   :  { %v2183_v12 = vadd.f32 %v4268_v38, %v2167_v43  ;;  %v3239_v18 = vadd.s32 4294967295, %v3223_v10  ;;  %v3274_v47 = vadd.f32 -0.1151461, %v1835_v26  ;;  %v2070_v0 = vadd.f32 0.3333333, %v2054_v48 }
  0xcd   :  { %v2025_v27 = vmul.f32 %v4344_v54, %v2009_v28  ;;  %v1928_v4 = vmul.f32 %v3287_v14, %v4400_v37  ;;  %v1658_v8 = vand.u32 8388607, %v1594_v13  ;;  %v1627_v44 = vshra.s32 %v1595_v34, 23 }
  0xce   :  { %v4450_v22 = vpop.xlane.xlu0 %2344  ;;  %v2215_v2 = vadd.f32 %v4397_v24, %v2183_v12  ;;  %v1867_v38 = vmul.f32 %v3274_v47, %v4436_v35  ;;  %v2086_v57 = vmul.f32 %v4320_v9, %v2070_v0  ;;  %vm1574_vm12 = vcmp.gt.f32.partialorder %v3891_v25, 0.0 }
  0xcf   :  { %v4453_v45 = vpop.xlane.xlu1 %2342  ;;  %v3320_v63 = vadd.f32 -0.24999994, %v2025_v27  ;;  %v1944_v36 = vadd.f32 0.14249323, %v1928_v4  ;;  %v4469_v6 = vor.u32 1056964608, %v1658_v8  ;;  %v4478_v34 = vsel %vm1704_vm8, %v3239_v18, %v3223_v10 }
  0xd0   :  { %v2231_v24 = vsel %vm1575_vm11, %v2215_v2, -inf  ;;  %v1883_v16 = vadd.f32 0.116769984, %v1867_v38  ;;  %v1596_v42 = vmax.f32 %v3960_v58, 1.1754944e-38  ;;  %v2102_v39 = vmul.f32 %v2086_v57, %v1814_v15 }
  0xd1   :  { %v2382_v52 = vsel %vm2323_vm2, %v2231_v24, 0.0  ;;  %v2057_v62 = vmul.f32 %v3320_v63, %v4344_v54  ;;  %v1960_v40 = vmul.f32 %v4400_v37, %v1944_v36  ;;  %v3226_v56 = vadd.s32 4294967170, %v1627_v44 }
  0xd2   :  { %v4466_v53 = vpop.xlane.xlu0 %2346  ;;  %2408 = vadd.xlane.f32.xlu1 %v2382_v52  ;;  %v1899_v33 = vmul.f32 %v4436_v35, %v1883_v16  ;;  %vm1706_vm13 = vcmp.lt.f32.partialorder %v4469_v6, 0.70710677  ;;  %v1770_v21 = vadd.f32 %v4469_v6, %v4469_v6  ;;  %v2134_v41 = vadd.f32 %v4410_v31, %v2102_v39 }
  0xd3   :  { %v4471_v46 = vpop.xlane.xlu1 %2348  ;;  %v2073_v59 = vadd.f32 0.3333333, %v2057_v62  ;;  %v1752_v15 = vcvt.s32.f32 %v4478_v34  ;;  %v3303_v50 = vadd.f32 -0.16668057, %v1960_v40  ;;  %v2201_v7 = vmul.f32 0.6933594, %v1753_v1 }
  0xd4   :  { %v3290_v23 = vadd.f32 -0.12420141, %v1899_v33  ;;  %v1786_v5 = vsel %vm1706_vm13, %v1770_v21, %v4469_v6  ;;  %v1660_v20 = vand.u32 8388607, %v1596_v42  ;;  %v2166_v43 = vsub.f32 %v2134_v41, %v2150_v51 }
  0xd5   :  { %v2089_v26 = vmul.f32 %v4344_v54, %v2073_v59  ;;  %v1992_v31 = vmul.f32 %v3303_v50, %v4400_v37  ;;  %v4502_v48 = vadd.f32 -1.0, %v1786_v5  ;;  %vm1577_vm14 = vcmp.gt.f32.partialorder %v3847_v61, 0.0 }
  0xd6   :  { %v4489_v19 = vpop.xlane.xlu0 %2350  ;;  %v2153_v28 = vmul.f32 0.5, %v1817_v29  ;;  %v3242_v14 = vadd.s32 4294967295, %v3226_v56  ;;  %v1931_v1 = vmul.f32 %v3290_v23, %v4436_v35  ;;  %v4506_v12 = vor.u32 1056964608, %v1660_v20 }
  0xd7   :  { %v4493_v10 = vpop.xlane.xlu1 %2352  ;;  %v2182_v47 = vadd.f32 %v4320_v9, %v2166_v43  ;;  %v2105_v0 = vmul.f32 %v2089_v26, %v1817_v29  ;;  %v2008_v51 = vadd.f32 0.20000714, %v1992_v31  ;;  %v4511_v27 = vmul.f32 -0.00021219444, %v1752_v15 }
  0xd8   :  { %v1947_v8 = vadd.f32 0.14249323, %v1931_v1  ;;  %v1834_v2 = vmul.f32 0.070376836, %v4502_v48  ;;  %vm1708_vm15 = vcmp.lt.f32.partialorder %v4506_v12, 0.70710677  ;;  %v1772_v44 = vadd.f32 %v4506_v12, %v4506_v12 }
  0xd9   :  { %v2214_v38 = vadd.f32 %v4446_v3, %v2182_v47  ;;  %v2137_v57 = vadd.f32 %v2121_v55, %v2105_v0  ;;  %v1816_v9 = vmul.f32 %v4400_v37, %v4400_v37  ;;  %v2024_v29 = vmul.f32 %v4400_v37, %v2008_v51 }
  0xda   :  { %v4508_v18 = vpop.xlane.xlu0 %2354  ;;  %v4525_v63 = vsel %vm1707_vm10, %v3242_v14, %v3226_v56  ;;  %v1963_v36 = vmul.f32 %v4436_v35, %v1947_v8  ;;  %v3273_v24 = vadd.f32 -0.1151461, %v1834_v2  ;;  %v1788_v34 = vsel %vm1708_vm15, %v1772_v44, %v4506_v12 }
  0xdb   :  { %v4513_v4 = vpop.xlane.xlu1 %2356  ;;  %v2230_v3 = vsel %vm1574_vm12, %v2214_v38, -inf  ;;  %v2169_v55 = vsub.f32 %v2137_v57, %v2153_v28  ;;  %v3319_v16 = vadd.f32 -0.24999994, %v2024_v29  ;;  %v4533_v52 = vadd.f32 -1.0, %v1788_v34 }
  0xdc   :  { %v2381_v32 = vsel %vm2323_vm2, %v2230_v3, 0.0  ;;  %v3306_v40 = vadd.f32 -0.16668057, %v1963_v36  ;;  %v1626_v56 = vshra.s32 %v1594_v13, 23  ;;  %v1866_v33 = vmul.f32 %v3273_v24, %v4502_v48 }
  0xdd   :  { %2406 = vadd.xlane.f32.xlu0 %v2381_v32  ;;  %v2185_v25 = vadd.f32 %v4344_v54, %v2169_v55  ;;  %v2056_v21 = vmul.f32 %v3319_v16, %v4400_v37  ;;  %v4546_v41 = vmul.f32 0.5, %v1816_v9  ;;  %v4548_v59 = vmul.f32 0.6933594, %v1752_v15 }
  0xde   :  { %v4537_v62 = vpop.xlane.xlu0 %2358  ;;  %v1995_v50 = vmul.f32 %v3306_v40, %v4436_v35  ;;  %v1882_v23 = vadd.f32 0.116769984, %v1866_v33  ;;  %v1836_v5 = vmul.f32 0.070376836, %v4533_v52  ;;  %v1755_v13 = vcvt.s32.f32 %v4525_v63 }
  0xdf   :  { %v4535_v39 = vpop.xlane.xlu1 %2360  ;;  %v2217_v20 = vadd.f32 %v2201_v7, %v2185_v25  ;;  %v2072_v43 = vadd.f32 0.3333333, %v2056_v21  ;;  %v4555_v26 = vmul.f32 %v4436_v35, %v4436_v35  ;;  %v3428_v54 = vmov 0.0  }
  0xe0   :  { %16 = vst [vmem:[#allocation2 + $0x8] sm:$0xff] %v3428_v54  ;;  %15 = vst [vmem:[#allocation2] sm:$0xff] %v3428_v54  ;;  %v2011_v7 = vadd.f32 0.20000714, %v1995_v50  ;;  %v4557_v31 = vadd.s32 4294967170, %v1626_v56  ;;  %v1898_v28 = vmul.f32 %v4502_v48, %v1882_v23  ;;  %vm2500_vm0 = vcmask 7168  }
  0xe1   :  { %17 = vst [vmem:[#allocation2 + $0x10] sm:$0xff] %v3428_v54  ;;  %18 = vst [vmem:[#allocation2 + $0x18] sm:$0xff] %v3428_v54  ;;  %v3275_v14 = vadd.f32 -0.1151461, %v1836_v5  ;;  %v2233_v1 = vsel %vm1577_vm14, %v2217_v20, -inf  ;;  %v2088_v47 = vmul.f32 %v4400_v37, %v2072_v43  ;;  %vm1576_vm1 = vcmp.gt.f32.partialorder %v3915_v17, 0.0 }
  0xe2   :  { %19 = vst [vmem:[#allocation2 + $0x20] sm:$0xff] %v3428_v54  ;;  %20 = vst [vmem:[#allocation2 + $0x28] sm:$0xff] %v3428_v54  ;;  %v2363_v15 = vpop.xlane.xlu0 %2362  ;;  %v2384_v51 = vsel %vm2323_vm2, %v2233_v1, 0.0  ;;  %v2027_v8 = vmul.f32 %v4436_v35, %v2011_v7  ;;  %v3289_v2 = vadd.f32 -0.12420141, %v1898_v28  ;;  %v3241_v33 = vadd.s32 4294967295, %v4557_v31 }
  0xe3   :  { %21 = vst [vmem:[#allocation2 + $0x30] sm:$0xff] %v3428_v54  ;;  %22 = vst [vmem:[#allocation2 + $0x38] sm:$0xff] %v3428_v54  ;;  %v2365_v0 = vpop.xlane.xlu1 %2364  ;;  %v1868_v44 = vmul.f32 %v3275_v14, %v4533_v52  ;;  %2412 = vadd.xlane.f32.xlu1 %v2384_v51  ;;  %v2104_v38 = vmul.f32 %v2088_v47, %v1816_v9  ;;  %v2203_v23 = vmul.f32 0.6933594, %v1755_v13  ;;  %vm1579_vm3 = vcmp.gt.f32.partialorder %v3911_v11, 0.0 }
  0xe4   :  { %23 = vst [vmem:[#allocation2 + $0x40] sm:$0xff] %v3428_v54  ;;  %24 = vst [vmem:[#allocation2 + $0x48] sm:$0xff] %v3428_v54  ;;  %v3322_v57 = vadd.f32 -0.24999994, %v2027_v8  ;;  %v1930_v29 = vmul.f32 %v3289_v2, %v4502_v48  ;;  %v1738_v17 = vsel %vm1706_vm13, %v3241_v33, %v4557_v31  ;;  %v1818_v1 = vmul.f32 %v4502_v48, %v4502_v48 }
  0xe5   :  { %25 = vst [vmem:[#allocation2 + $0x50] sm:$0xff] %v3428_v54  ;;  %26 = vst [vmem:[#allocation2 + $0x58] sm:$0xff] %v3428_v54  ;;  %v1884_v36 = vadd.f32 0.116769984, %v1868_v44  ;;  %v2136_v24 = vadd.f32 %v4511_v27, %v2104_v38  ;;  %v1754_v28 = vcvt.s32.f32 %v1738_v17  ;;  %vm1578_vm4 = vcmp.gt.f32.partialorder %v3922_v49, 0.0 }
  0xe6   :  { %27 = vst [vmem:[#allocation2 + $0x60] sm:$0xff] %v3428_v54  ;;  %28 = vst [vmem:[#allocation2 + $0x68] sm:$0xff] %v3428_v54  ;;  %v2367_v61 = vpop.xlane.xlu0 %2366  ;;  %v2059_v9 = vmul.f32 %v3322_v57, %v4436_v35  ;;  %v1946_v34 = vadd.f32 0.14249323, %v1930_v29  ;;  %v2154_v2 = vmul.f32 0.5, %v1818_v1  ;;  %v1820_v57 = vmul.f32 %v4533_v52, %v4533_v52 }
  0xe7   :  { %29 = vst [vmem:[#allocation2 + $0x70] sm:$0xff] %v3428_v54  ;;  %30 = vst [vmem:[#allocation2 + $0x78] sm:$0xff] %v3428_v54  ;;  %v2168_v3 = vsub.f32 %v2136_v24, %v4546_v41  ;;  %v2202_v24 = vmul.f32 0.6933594, %v1754_v28  ;;  %vm1580_vm5 = vcmp.gt.f32.partialorder %v3960_v58, 0.0  ;;  %vm2549_vm6 = vcmask 15368  }
  0xe8   :  { %2502 = vst.msk [vmem:[#allocation2 + $0x8] sm:$0xff] %vm2500_vm0, %v4453_v45  ;;  %2501 = vst.msk [vmem:[#allocation2] sm:$0xff] %vm2500_vm0, %v4433_v30  ;;  %v1900_v45 = vmul.f32 %v4533_v52, %v1884_v36  ;;  %v2369_v30 = vpop.xlane.xlu1 %2368  ;;  %v1962_v27 = vmul.f32 %v4502_v48, %v1946_v34 }
  0xe9   :  { %2505 = vst.msk [vmem:[#allocation2 + $0x20] sm:$0xff] %vm2500_vm0, %v4471_v46  ;;  %2503 = vst.msk [vmem:[#allocation2 + $0x10] sm:$0xff] %vm2500_vm0, %v4450_v22  ;;  %v2075_v46 = vadd.f32 0.3333333, %v2059_v9 }
  0xea   :  { %2507 = vst.msk [vmem:[#allocation2 + $0x30] sm:$0xff] %vm2500_vm0, %v4493_v10  ;;  %2504 = vst.msk [vmem:[#allocation2 + $0x18] sm:$0xff] %vm2500_vm0, %v4466_v53  ;;  %v2371_v22 = vpop.xlane.xlu0 %2370  ;;  %v3291_v55 = vadd.f32 -0.12420141, %v1900_v45  ;;  %v2184_v10 = vadd.f32 %v4400_v37, %v2168_v3  ;;  %v2156_v3 = vmul.f32 0.5, %v1820_v57 }
  0xeb   :  { %2509 = vst.msk [vmem:[#allocation2 + $0x40] sm:$0xff] %vm2500_vm0, %v4513_v4  ;;  %2506 = vst.msk [vmem:[#allocation2 + $0x28] sm:$0xff] %vm2500_vm0, %v4489_v19  ;;  %v2091_v53 = vmul.f32 %v4436_v35, %v2075_v46  ;;  %v2123_v19 = vmul.f32 -0.00021219444, %v1755_v13  ;;  %v3305_v4 = vadd.f32 -0.16668057, %v1962_v27 }
  0xec   :  { %2511 = vst.msk [vmem:[#allocation2 + $0x50] sm:$0xff] %vm2500_vm0, %v4535_v39  ;;  %2508 = vst.msk [vmem:[#allocation2 + $0x38] sm:$0xff] %vm2500_vm0, %v4508_v18  ;;  %v1932_v16 = vmul.f32 %v3291_v55, %v4533_v52  ;;  %v2216_v37 = vadd.f32 %v4548_v59, %v2184_v10  ;;  %v1628_v18 = vshra.s32 %v1596_v42, 23 }
  0xed   :  { %2513 = vst.msk [vmem:[#allocation2 + $0x60] sm:$0xff] %vm2500_vm0, %v2365_v0  ;;  %2510 = vst.msk [vmem:[#allocation2 + $0x48] sm:$0xff] %vm2500_vm0, %v4537_v62  ;;  %v2107_v39 = vmul.f32 %v2091_v53, %v4555_v26  ;;  %v2155_v62 = vmul.f32 0.5, %v4555_v26  ;;  %v1994_v32 = vmul.f32 %v3305_v4, %v4502_v48  ;;  %v2122_v0 = vmul.f32 -0.00021219444, %v1754_v28 }
  0xee   :  { %2515 = vst.msk [vmem:[#allocation2 + $0x70] sm:$0xff] %vm2500_vm0, %v2369_v30  ;;  %2512 = vst.msk [vmem:[#allocation2 + $0x58] sm:$0xff] %vm2500_vm0, %v2363_v15  ;;  %v1948_v40 = vadd.f32 0.14249323, %v1932_v16  ;;  %v2232_v56 = vsel %vm1576_vm1, %v2216_v37, -inf  ;;  %v3227_v59 = vadd.s32 4294967170, %v1628_v18 }
  0xef   :  { %2514 = vst.msk [vmem:[#allocation2 + $0x68] sm:$0xff] %vm2500_vm0, %v2367_v61  ;;  %2516 = vst.msk [vmem:[#allocation2 + $0x78] sm:$0xff] %vm2500_vm0, %v2371_v22  ;;  %v2383_v42 = vsel %vm2323_vm2, %v2232_v56, 0.0  ;;  %v2139_v25 = vadd.f32 %v2123_v19, %v2107_v39  ;;  %v2010_v21 = vadd.f32 0.20000714, %v1994_v32  ;;  %v2517_v39 = vld [vmem:[#allocation2] sm:$0xff] }
  0xf0   :  { %v1964_v41 = vmul.f32 %v4533_v52, %v1948_v40  ;;  %2410 = vadd.xlane.f32.xlu0 %v2383_v42  ;;  %v3243_v15 = vadd.s32 4294967295, %v3227_v59  ;;  %v2518_v33 = vld [vmem:[#allocation2 + $0x8] sm:$0xff] }
  0xf1   :  { %v2171_v50 = vsub.f32 %v2139_v25, %v2155_v62  ;;  %v2026_v5 = vmul.f32 %v4502_v48, %v2010_v21  ;;  %v2521_v25 = vld [vmem:[#allocation2 + $0x20] sm:$0xff]  ;;  %v2523_v17 = vld [vmem:[#allocation2 + $0x30] sm:$0xff] }
  0xf2   :  { %v3307_v20 = vadd.f32 -0.16668057, %v1964_v41  ;;  %v1740_v31 = vsel %vm1708_vm15, %v3243_v15, %v3227_v59 }
  0xf3   :  { %v2187_v43 = vadd.f32 %v4436_v35, %v2171_v50  ;;  %v3321_v26 = vadd.f32 -0.24999994, %v2026_v5  ;;  %v1756_v44 = vcvt.s32.f32 %v1740_v31 }
  0xf4   :  { %v1996_v54 = vmul.f32 %v3307_v20, %v4533_v52 }
  0xf5   :  { %v2219_v7 = vadd.f32 %v2203_v23, %v2187_v43  ;;  %v2058_v63 = vmul.f32 %v3321_v26, %v4502_v48  ;;  %v2124_v9 = vmul.f32 -0.00021219444, %v1756_v44  ;;  %v2204_v55 = vmul.f32 0.6933594, %v1756_v44  ;;  %v2520_v23 = vld [vmem:[#allocation2 + $0x18] sm:$0xff] }
  0xf6   :  { %v2012_v13 = vadd.f32 0.20000714, %v1996_v54 }
  0xf7   :  { %v2235_v14 = vsel %vm1579_vm3, %v2219_v7, -inf  ;;  %v2074_v47 = vadd.f32 0.3333333, %v2058_v63  ;;  %v2522_v7 = vld [vmem:[#allocation2 + $0x28] sm:$0xff] }
  0xf8   :  { %v2028_v6 = vmul.f32 %v4533_v52, %v2012_v13  ;;  %v2386_v35 = vsel %vm2323_vm2, %v2235_v14, 0.0  ;;  %v2525_v13 = vld [vmem:[#allocation2 + $0x40] sm:$0xff] }
  0xf9   :  { %2416 = vadd.xlane.f32.xlu1 %v2386_v35  ;;  %v2090_v11 = vmul.f32 %v4502_v48, %v2074_v47 }
  0xfa   :  { %v3323_v51 = vadd.f32 -0.24999994, %v2028_v6 }
  0xfb   :  { %v2106_v8 = vmul.f32 %v2090_v11, %v1818_v1  ;;  %v2524_v11 = vld [vmem:[#allocation2 + $0x38] sm:$0xff] }
  0xfc   :  { %v2060_v38 = vmul.f32 %v3323_v51, %v4533_v52 }
  0xfd   :  { %v2138_v61 = vadd.f32 %v2122_v0, %v2106_v8  ;;  %v2527_v8 = vld [vmem:[#allocation2 + $0x50] sm:$0xff] }
  0xfe   :  { %v2076_v29 = vadd.f32 0.3333333, %v2060_v38 }
  0xff   :  { %v2170_v36 = vsub.f32 %v2138_v61, %v2154_v2 }
 0x100   :  { %v2092_v12 = vmul.f32 %v4533_v52, %v2076_v29 }
 0x101   :  { %v2186_v34 = vadd.f32 %v4502_v48, %v2170_v36  ;;  %v2389_v49 = vpop.xlane.xlu1 %2388  ;;  %v2526_v36 = vld [vmem:[#allocation2 + $0x48] sm:$0xff] }
 0x102   :  { %v2108_v45 = vmul.f32 %v2092_v12, %v1820_v57 }
 0x103   :  { %v2218_v30 = vadd.f32 %v2202_v24, %v2186_v34 }
 0x104   :  { %v2140_v22 = vadd.f32 %v2124_v9, %v2108_v45  ;;  %v2529_v9 = vld [vmem:[#allocation2 + $0x60] sm:$0xff] }
 0x105   :  { %v2234_v46 = vsel %vm1578_vm4, %v2218_v30, -inf }
 0x106   :  { %v2172_v27 = vsub.f32 %v2140_v22, %v2156_v3  ;;  %v2385_v10 = vsel %vm2323_vm2, %v2234_v46, 0.0  ;;  %v2393_v16 = vpop.xlane.xlu1 %2392  ;;  %v2528_v22 = vld [vmem:[#allocation2 + $0x58] sm:$0xff] }
 0x107   :  { %2414 = vadd.xlane.f32.xlu0 %v2385_v10  ;;  %v2531_v10 = vld [vmem:[#allocation2 + $0x70] sm:$0xff] }
 0x108   :  { %v2188_v53 = vadd.f32 %v4533_v52, %v2172_v27  ;;  %v2519_v52 = vld [vmem:[#allocation2 + $0x10] sm:$0xff] }
 0x10a   :  { %v2220_v19 = vadd.f32 %v2204_v55, %v2188_v53 }
 0x10c   :  { %v2236_v4 = vsel %vm1580_vm5, %v2220_v19, -inf }
 0x10d   :  { %v2387_v48 = vsel %vm2323_vm2, %v2236_v4, 0.0  ;;  %vm2598_vm2 = vcmask 23568  }
 0x10e   :  { %2418 = vadd.xlane.f32.xlu0 %v2387_v48 }
 0x111   :  { %v2391_v18 = vpop.xlane.xlu0 %2390 }
 0x117   :  { %v2397_v37 = vpop.xlane.xlu1 %2396 }
 0x11b   :  { %v2437_v62 = vpop.xlane.xlu1 %2436 }
 0x11c   :  { %v2533_v32 = vadd.f32 %v2517_v39, %v2437_v62 }
 0x11e   :  { %v2395_v40 = vpop.xlane.xlu0 %2394  ;;  %2550 = vst.msk [vmem:[#allocation2] sm:$0xff] %vm2549_vm6, %v2533_v32 }
 0x11f   :  { %v2441_v56 = vpop.xlane.xlu1 %2440 }
 0x120   :  { %v2535_v58 = vadd.f32 %v2519_v52, %v2441_v56 }
 0x122   :  { %v2439_v42 = vpop.xlane.xlu0 %2438  ;;  %2552 = vst.msk [vmem:[#allocation2 + $0x10] sm:$0xff] %vm2549_vm6, %v2535_v58 }
 0x123   :  { %v2534_v60 = vadd.f32 %v2518_v33, %v2439_v42  ;;  %v2445_v21 = vpop.xlane.xlu1 %2444  ;;  %v2532_v33 = vld [vmem:[#allocation2 + $0x78] sm:$0xff] }
 0x124   :  { %v2537_v41 = vadd.f32 %v2521_v25, %v2445_v21 }
 0x125   :  { %v2566_v59 = vld [vmem:[#allocation2] sm:$0xff]  ;;  %2551 = vst.msk [vmem:[#allocation2 + $0x8] sm:$0xff] %vm2549_vm6, %v2534_v60 }
 0x126   :  { %v2582_v50 = vadd.f32 %v2566_v59, %v2389_v49  ;;  %v2443_v5 = vpop.xlane.xlu0 %2442  ;;  %2554 = vst.msk [vmem:[#allocation2 + $0x20] sm:$0xff] %vm2549_vm6, %v2537_v41 }
 0x127   :  { %v2536_v20 = vadd.f32 %v2520_v23, %v2443_v5  ;;  %v2449_v43 = vpop.xlane.xlu1 %2448 }
 0x128   :  { %2599 = vst.msk [vmem:[#allocation2] sm:$0xff] %vm2598_vm2, %v2582_v50  ;;  %v2539_v26 = vadd.f32 %v2523_v17, %v2449_v43 }
 0x129   :  { %v2568_v54 = vld [vmem:[#allocation2 + $0x10] sm:$0xff]  ;;  %2553 = vst.msk [vmem:[#allocation2 + $0x18] sm:$0xff] %vm2549_vm6, %v2536_v20 }
 0x12a   :  { %v2584_v15 = vadd.f32 %v2568_v54, %v2393_v16  ;;  %v2447_v28 = vpop.xlane.xlu0 %2446  ;;  %2556 = vst.msk [vmem:[#allocation2 + $0x30] sm:$0xff] %vm2549_vm6, %v2539_v26  ;;  %v2530_v16 = vld [vmem:[#allocation2 + $0x68] sm:$0xff] }
 0x12b   :  { %v2538_v63 = vadd.f32 %v2522_v7, %v2447_v28  ;;  %v2453_v14 = vpop.xlane.xlu1 %2452 }
 0x12c   :  { %v2567_v1 = vld [vmem:[#allocation2 + $0x8] sm:$0xff]  ;;  %2601 = vst.msk [vmem:[#allocation2 + $0x10] sm:$0xff] %vm2598_vm2, %v2584_v15  ;;  %v2541_v47 = vadd.f32 %v2525_v13, %v2453_v14 }
 0x12d   :  { %v2583_v6 = vadd.f32 %v2567_v1, %v2391_v18  ;;  %v2570_v35 = vld [vmem:[#allocation2 + $0x20] sm:$0xff]  ;;  %2555 = vst.msk [vmem:[#allocation2 + $0x28] sm:$0xff] %vm2549_vm6, %v2538_v63 }
 0x12e   :  { %v2586_v31 = vadd.f32 %v2570_v35, %v2397_v37  ;;  %v2451_v0 = vpop.xlane.xlu0 %2450  ;;  %2558 = vst.msk [vmem:[#allocation2 + $0x40] sm:$0xff] %vm2549_vm6, %v2541_v47 }
 0x12f   :  { %2600 = vst.msk [vmem:[#allocation2 + $0x8] sm:$0xff] %vm2598_vm2, %v2583_v6  ;;  %v2540_v51 = vadd.f32 %v2524_v11, %v2451_v0  ;;  %v2457_v2 = vpop.xlane.xlu1 %2456  ;;  %v4659_v44 = vld [vmem:[#allocation2] sm:$0xff] }
 0x130   :  { %v2569_v38 = vld [vmem:[#allocation2 + $0x18] sm:$0xff]  ;;  %2603 = vst.msk [vmem:[#allocation2 + $0x20] sm:$0xff] %vm2598_vm2, %v2586_v31  ;;  %v2543_v61 = vadd.f32 %v2527_v8, %v2457_v2  ;;  %v2631_v57 = vadd.f32 1e-08, %v4659_v44 }
 0x131   :  { %v2585_v29 = vadd.f32 %v2569_v38, %v2395_v40  ;;  %2557 = vst.msk [vmem:[#allocation2 + $0x38] sm:$0xff] %vm2549_vm6, %v2540_v51  ;;  %v2572_v62 = vld [vmem:[#allocation2 + $0x30] sm:$0xff] }
 0x132   :  { %v2455_v24 = vpop.xlane.xlu0 %2454  ;;  %2560 = vst.msk [vmem:[#allocation2 + $0x50] sm:$0xff] %vm2549_vm6, %v2543_v61  ;;  %3395 = vlog2.f32 %v2631_v57 }
 0x133   :  { %2602 = vst.msk [vmem:[#allocation2 + $0x18] sm:$0xff] %vm2598_vm2, %v2585_v29  ;;  %v2542_v12 = vadd.f32 %v2526_v36, %v2455_v24  ;;  %v2461_v34 = vpop.xlane.xlu1 %2460  ;;  %v4666_v45 = vld [vmem:[#allocation2 + $0x10] sm:$0xff] }
 0x134   :  { %v2545_v3 = vadd.f32 %v2529_v9, %v2461_v34  ;;  %v2633_v30 = vadd.f32 1e-08, %v4666_v45  ;;  %v2571_v59 = vld [vmem:[#allocation2 + $0x28] sm:$0xff] }
 0x135   :  { %2559 = vst.msk [vmem:[#allocation2 + $0x48] sm:$0xff] %vm2549_vm6, %v2542_v12  ;;  %v2574_v14 = vld [vmem:[#allocation2 + $0x40] sm:$0xff] }
 0x136   :  { %v2459_v46 = vpop.xlane.xlu0 %2458  ;;  %2562 = vst.msk [vmem:[#allocation2 + $0x60] sm:$0xff] %vm2549_vm6, %v2545_v3  ;;  %v4671_v27 = vld [vmem:[#allocation2 + $0x8] sm:$0xff]  ;;  %3397 = vlog2.f32 %v2633_v30 }
 0x137   :  { %v2544_v55 = vadd.f32 %v2528_v22, %v2459_v46  ;;  %v2465_v53 = vpop.xlane.xlu1 %2464  ;;  %v2632_v19 = vadd.f32 1e-08, %v4671_v27  ;;  %v4674_v4 = vld [vmem:[#allocation2 + $0x20] sm:$0xff] }
 0x138   :  { %v2547_v48 = vadd.f32 %v2531_v10, %v2465_v53  ;;  %v2635_v49 = vadd.f32 1e-08, %v4674_v4  ;;  %v2573_v38 = vld [vmem:[#allocation2 + $0x38] sm:$0xff] }
 0x139   :  { %2561 = vst.msk [vmem:[#allocation2 + $0x58] sm:$0xff] %vm2549_vm6, %v2544_v55  ;;  %3399 = vlog2.f32 %v2632_v19  ;;  %v2576_v12 = vld [vmem:[#allocation2 + $0x50] sm:$0xff] }
 0x13a   :  { %v2463_v37 = vpop.xlane.xlu0 %2462  ;;  %2564 = vst.msk [vmem:[#allocation2 + $0x70] sm:$0xff] %vm2549_vm6, %v2547_v48  ;;  %v4679_v18 = vld [vmem:[#allocation2 + $0x18] sm:$0xff]  ;;  %3401 = vlog2.f32 %v2635_v49 }
 0x13b   :  { %v2546_v39 = vadd.f32 %v2530_v16, %v2463_v37  ;;  %v2401_v32 = vpop.xlane.xlu1 %2400  ;;  %v2634_v40 = vadd.f32 1e-08, %v4679_v18 }
 0x13c   :  { %v3396_v52 = vpop.eup %3395  ;;  %v2588_v56 = vadd.f32 %v2572_v62, %v2401_v32  ;;  %v2575_v53 = vld [vmem:[#allocation2 + $0x48] sm:$0xff] }
 0x13d   :  { %2563 = vst.msk [vmem:[#allocation2 + $0x68] sm:$0xff] %vm2549_vm6, %v2546_v39  ;;  %v4683_v58 = vmul.f32 0.6931472, %v3396_v52  ;;  %3403 = vlog2.f32 %v2634_v40  ;;  %v2578_v39 = vld [vmem:[#allocation2 + $0x60] sm:$0xff] }
 0x13e   :  { %v2467_v42 = vpop.xlane.xlu0 %2466  ;;  %2605 = vst.msk [vmem:[#allocation2 + $0x30] sm:$0xff] %vm2598_vm2, %v2588_v56 }
 0x13f   :  { %v2548_v60 = vadd.f32 %v2532_v33, %v2467_v42  ;;  %v2775_v25 = vmul.f32 32.0, %v4683_v58 }
 0x140   :  { %v3398_v21 = vpop.eup %3397 }
 0x141   :  { %2565 = vst.msk [vmem:[#allocation2 + $0x78] sm:$0xff] %vm2549_vm6, %v2548_v60  ;;  %2807 = vrot.lane.b32.xlu1 %v2775_v25, %s3429_s0  ;;  %v4689_v41 = vmul.f32 0.6931472, %v3398_v21 }
 0x142   :  { %v2399_v50 = vpop.xlane.xlu0 %2398 }
 0x143   :  { %v3400_v23 = vpop.eup %3399  ;;  %v2587_v5 = vadd.f32 %v2571_v59, %v2399_v50  ;;  %v2777_v20 = vmul.f32 32.0, %v4689_v41  ;;  %v2577_v59 = vld [vmem:[#allocation2 + $0x58] sm:$0xff] }
 0x144   :  { %v3402_v17 = vpop.eup %3401  ;;  %v4692_v43 = vmul.f32 0.6931472, %v3400_v23 }
 0x145   :  { %2604 = vst.msk [vmem:[#allocation2 + $0x28] sm:$0xff] %vm2598_vm2, %v2587_v5  ;;  %2811 = vrot.lane.b32.xlu1 %v2777_v20, %s3429_s0  ;;  %v4696_v26 = vmul.f32 0.6931472, %v3402_v17  ;;  %v4698_v54 = vld [vmem:[#allocation2 + $0x30] sm:$0xff] }
 0x146   :  { %v2776_v15 = vmul.f32 32.0, %v4692_v43  ;;  %v2637_v7 = vadd.f32 1e-08, %v4698_v54 }
 0x147   :  { %v3404_v28 = vpop.eup %3403  ;;  %v2779_v13 = vmul.f32 32.0, %v4696_v26 }
 0x148   :  { %2809 = vrot.lane.b32.xlu0 %v2776_v15, %s3429_s0  ;;  %v4703_v63 = vmul.f32 0.6931472, %v3404_v28  ;;  %3405 = vlog2.f32 %v2637_v7  ;;  %v2580_v15 = vld [vmem:[#allocation2 + $0x70] sm:$0xff] }
 0x14a   :  { %v2405_v1 = vpop.xlane.xlu1 %2404  ;;  %v2778_v47 = vmul.f32 32.0, %v4703_v63 }
 0x14b   :  { %v2590_v6 = vadd.f32 %v2574_v14, %v2405_v1 }
 0x14c   :  { %2813 = vrot.lane.b32.xlu1 %v2778_v47, %s3429_s0  ;;  %2815 = vrot.lane.b32.xlu0 %v2779_v13, %s3429_s0  ;;  %v4709_v35 = vld [vmem:[#allocation2 + $0x28] sm:$0xff] }
 0x14d   :  { %2607 = vst.msk [vmem:[#allocation2 + $0x40] sm:$0xff] %vm2598_vm2, %v2590_v6  ;;  %v2636_v31 = vadd.f32 1e-08, %v4709_v35 }
 0x14f   :  { %3407 = vlog2.f32 %v2636_v31 }
 0x152   :  { %v3406_v11 = vpop.eup %3405 }
 0x153   :  { %v4713_v0 = vmul.f32 0.6931472, %v3406_v11 }
 0x154   :  { %v4715_v51 = vld [vmem:[#allocation2 + $0x40] sm:$0xff] }
 0x155   :  { %v2781_v8 = vmul.f32 32.0, %v4713_v0  ;;  %v2639_v2 = vadd.f32 1e-08, %v4715_v51 }
 0x156   :  { %v2403_v61 = vpop.xlane.xlu0 %2402 }
 0x157   :  { %v2589_v57 = vadd.f32 %v2573_v38, %v2403_v61  ;;  %2819 = vrot.lane.b32.xlu0 %v2781_v8, %s3429_s0  ;;  %3409 = vlog2.f32 %v2639_v2  ;;  %v2579_v2 = vld [vmem:[#allocation2 + $0x68] sm:$0xff] }
 0x159   :  { %v3408_v29 = vpop.eup %3407  ;;  %2606 = vst.msk [vmem:[#allocation2 + $0x38] sm:$0xff] %vm2598_vm2, %v2589_v57 }
 0x15a   :  { %v4721_v36 = vmul.f32 0.6931472, %v3408_v29 }
 0x15c   :  { %v2780_v24 = vmul.f32 32.0, %v4721_v36 }
 0x15e   :  { %2817 = vrot.lane.b32.xlu1 %v2780_v24, %s3429_s0  ;;  %v2581_v24 = vld [vmem:[#allocation2 + $0x78] sm:$0xff] }
 0x15f   :  { %v2409_v9 = vpop.xlane.xlu1 %2408 }
 0x160   :  { %v2592_v34 = vadd.f32 %v2576_v12, %v2409_v9  ;;  %v4725_v3 = vld [vmem:[#allocation2 + $0x38] sm:$0xff] }
 0x161   :  { %v3410_v30 = vpop.eup %3409  ;;  %v2638_v22 = vadd.f32 1e-08, %v4725_v3 }
 0x162   :  { %2609 = vst.msk [vmem:[#allocation2 + $0x50] sm:$0xff] %vm2598_vm2, %v2592_v34  ;;  %v4729_v46 = vmul.f32 0.6931472, %v3410_v30 }
 0x163   :  { %3411 = vlog2.f32 %v2638_v22 }
 0x164   :  { %v2783_v55 = vmul.f32 32.0, %v4729_v46 }
 0x166   :  { %2823 = vrot.lane.b32.xlu0 %v2783_v55, %s3429_s0 }
 0x169   :  { %v4733_v10 = vld [vmem:[#allocation2 + $0x50] sm:$0xff] }
 0x16a   :  { %v2407_v19 = vpop.xlane.xlu0 %2406  ;;  %v2641_v48 = vadd.f32 1e-08, %v4733_v10 }
 0x16b   :  { %v2591_v49 = vadd.f32 %v2575_v53, %v2407_v19 }
 0x16c   :  { %3413 = vlog2.f32 %v2641_v48 }
 0x16d   :  { %2608 = vst.msk [vmem:[#allocation2 + $0x48] sm:$0xff] %vm2598_vm2, %v2591_v49  ;;  %v3412_v16 = vpop.eup %3411 }
 0x16e   :  { %v4737_v37 = vmul.f32 0.6931472, %v3412_v16 }
 0x170   :  { %v2413_v62 = vpop.xlane.xlu1 %2412  ;;  %v2782_v40 = vmul.f32 32.0, %v4737_v37 }
 0x171   :  { %v2594_v32 = vadd.f32 %v2578_v39, %v2413_v62 }
 0x172   :  { %2821 = vrot.lane.b32.xlu1 %v2782_v40, %s3429_s0 }
 0x173   :  { %2611 = vst.msk [vmem:[#allocation2 + $0x60] sm:$0xff] %vm2598_vm2, %v2594_v32 }
 0x174   :  { %v4742_v52 = vld [vmem:[#allocation2 + $0x48] sm:$0xff] }
 0x175   :  { %v2640_v56 = vadd.f32 1e-08, %v4742_v52 }
 0x176   :  { %v3414_v33 = vpop.eup %3413 }
 0x177   :  { %v4745_v42 = vmul.f32 0.6931472, %v3414_v33  ;;  %3415 = vlog2.f32 %v2640_v56 }
 0x179   :  { %v2785_v60 = vmul.f32 32.0, %v4745_v42 }
 0x17a   :  { %v4748_v25 = vld [vmem:[#allocation2 + $0x60] sm:$0xff] }
 0x17b   :  { %2827 = vrot.lane.b32.xlu0 %v2785_v60, %s3429_s0  ;;  %v2643_v21 = vadd.f32 1e-08, %v4748_v25 }
 0x17d   :  { %v2411_v50 = vpop.xlane.xlu0 %2410  ;;  %3417 = vlog2.f32 %v2643_v21 }
 0x17e   :  { %v2593_v23 = vadd.f32 %v2577_v59, %v2411_v50 }
 0x180   :  { %2610 = vst.msk [vmem:[#allocation2 + $0x58] sm:$0xff] %vm2598_vm2, %v2593_v23 }
 0x181   :  { %v3416_v5 = vpop.eup %3415 }
 0x182   :  { %v4753_v20 = vmul.f32 0.6931472, %v3416_v5 }
 0x184   :  { %v2784_v17 = vmul.f32 32.0, %v4753_v20 }
 0x186   :  { %v2417_v7 = vpop.xlane.xlu1 %2416  ;;  %2825 = vrot.lane.b32.xlu1 %v2784_v17, %s3429_s0 }
 0x187   :  { %v2596_v28 = vadd.f32 %v2580_v15, %v2417_v7  ;;  %v4757_v13 = vld [vmem:[#allocation2 + $0x58] sm:$0xff]  ;;  %v3418_v14 = vpop.eup %3417 }
 0x188   :  { %v2642_v1 = vadd.f32 1e-08, %v4757_v13  ;;  %v4761_v47 = vmul.f32 0.6931472, %v3418_v14 }
 0x189   :  { %2613 = vst.msk [vmem:[#allocation2 + $0x70] sm:$0xff] %vm2598_vm2, %v2596_v28 }
 0x18a   :  { %3419 = vlog2.f32 %v2642_v1  ;;  %v2787_v6 = vmul.f32 32.0, %v4761_v47 }
 0x18c   :  { %2831 = vrot.lane.b32.xlu0 %v2787_v6, %s3429_s0 }
 0x190   :  { %v4765_v31 = vld [vmem:[#allocation2 + $0x70] sm:$0xff] }
 0x191   :  { %v2645_v11 = vadd.f32 1e-08, %v4765_v31 }
 0x193   :  { %3421 = vlog2.f32 %v2645_v11 }
 0x194   :  { %v3420_v8 = vpop.eup %3419  ;;  %v2415_v38 = vpop.xlane.xlu0 %2414 }
 0x195   :  { %v2595_v61 = vadd.f32 %v2579_v2, %v2415_v38  ;;  %v4768_v57 = vmul.f32 0.6931472, %v3420_v8 }
 0x197   :  { %2612 = vst.msk [vmem:[#allocation2 + $0x68] sm:$0xff] %vm2598_vm2, %v2595_v61  ;;  %v2786_v29 = vmul.f32 32.0, %v4768_v57 }
 0x199   :  { %2829 = vrot.lane.b32.xlu1 %v2786_v29, %s3429_s0 }
 0x19b   :  { %v2419_v12 = vpop.xlane.xlu0 %2418 }
 0x19c   :  { %v2597_v9 = vadd.f32 %v2581_v24, %v2419_v12 }
 0x19d   :  { %v3422_v34 = vpop.eup %3421 }
 0x19e   :  { %2614 = vst.msk [vmem:[#allocation2 + $0x78] sm:$0xff] %vm2598_vm2, %v2597_v9  ;;  %v4774_v30 = vmul.f32 0.6931472, %v3422_v34  ;;  %v4776_v22 = vld [vmem:[#allocation2 + $0x68] sm:$0xff] }
 0x19f   :  { %v2644_v55 = vadd.f32 1e-08, %v4776_v22 }
 0x1a0   :  { %v2789_v53 = vmul.f32 32.0, %v4774_v30 }
 0x1a1   :  { %3423 = vlog2.f32 %v2644_v55 }
 0x1a2   :  { %2835 = vrot.lane.b32.xlu0 %v2789_v53, %s3429_s0 }
 0x1a5   :  { %v4781_v19 = vld [vmem:[#allocation2 + $0x78] sm:$0xff] }
 0x1a6   :  { %v2646_v48 = vadd.f32 1e-08, %v4781_v19  ;;  %2695 = vrot.lane.b32.xlu0 %v4683_v58, %s3430_s16 }
 0x1a8   :  { %3425 = vlog2.f32 %v2646_v48 }
 0x1aa   :  { %2699 = vrot.lane.b32.xlu0 %v4689_v41, %s3430_s16 }
 0x1ab   :  { %v3424_v49 = vpop.eup %3423 }
 0x1ac   :  { %v4788_v16 = vmul.f32 0.6931472, %v3424_v49 }
 0x1ae   :  { %v2788_v39 = vmul.f32 32.0, %v4788_v16  ;;  %2703 = vrot.lane.b32.xlu0 %v4696_v26, %s3430_s16 }
 0x1b0   :  { %2833 = vrot.lane.b32.xlu1 %v2788_v39, %s3429_s0 }
 0x1b2   :  { %v3426_v62 = vpop.eup %3425  ;;  %2707 = vrot.lane.b32.xlu0 %v4713_v0, %s3430_s16 }
 0x1b3   :  { %v4794_v32 = vmul.f32 0.6931472, %v3426_v62  ;;  %v2808_v56 = vpop.permute.xlu1 %2807 }
 0x1b4   :  { %v2855_v33 = vsub.f32 %v4659_v44, %v2808_v56 }
 0x1b5   :  { %v2790_v40 = vmul.f32 32.0, %v4794_v32 }
 0x1b6   :  { %2711 = vrot.lane.b32.xlu0 %v4729_v46, %s3430_s16  ;;  %v2871_v21 = vsub.f32 0.0, %v2855_v33 }
 0x1b7   :  { %2837 = vrot.lane.b32.xlu1 %v2790_v40, %s3429_s0  ;;  %v2812_v60 = vpop.permute.xlu1 %2811 }
 0x1b8   :  { %v2857_v59 = vsub.f32 %v4666_v45, %v2812_v60  ;;  %v2888_v23 = vmul.f32 0.03125, %v2871_v21 }
 0x1ba   :  { %2715 = vrot.lane.b32.xlu0 %v4745_v42, %s3430_s16  ;;  %v2810_v50 = vpop.permute.xlu0 %2809  ;;  %v2873_v5 = vsub.f32 0.0, %v2857_v59  ;;  %v2920_v15 = vmul.f32 0.001, %v2888_v23 }
 0x1bb   :  { %2697 = vrot.lane.b32.xlu1 %v4692_v43, %s3430_s16 }
 0x1bc   :  { %v2890_v45 = vmul.f32 0.03125, %v2873_v5 }
 0x1be   :  { %2719 = vrot.lane.b32.xlu0 %v4761_v47, %s3430_s16  ;;  %v2816_v44 = vpop.permute.xlu0 %2815  ;;  %v2922_v28 = vmul.f32 0.001, %v2890_v45  ;;  %v2814_v6 = vpop.permute.xlu1 %2813 }
 0x1bf   :  { %2701 = vrot.lane.b32.xlu1 %v4703_v63, %s3430_s16  ;;  %v2859_v17 = vsub.f32 %v4674_v4, %v2816_v44  ;;  %v2856_v4 = vsub.f32 %v4671_v27, %v2810_v50  ;;  %v2858_v38 = vsub.f32 %v4679_v18, %v2814_v6 }
 0x1c1   :  { %v2875_v7 = vsub.f32 0.0, %v2859_v17  ;;  %v2872_v2 = vsub.f32 0.0, %v2856_v4  ;;  %v2874_v24 = vsub.f32 0.0, %v2858_v38 }
 0x1c2   :  { %2723 = vrot.lane.b32.xlu0 %v4774_v30, %s3430_s16 }
 0x1c3   :  { %2705 = vrot.lane.b32.xlu1 %v4721_v36, %s3430_s16  ;;  %v2892_v14 = vmul.f32 0.03125, %v2875_v7  ;;  %v2889_v27 = vmul.f32 0.03125, %v2872_v2  ;;  %v2891_v18 = vmul.f32 0.03125, %v2874_v24 }
 0x1c5   :  { %v2924_v1 = vmul.f32 0.001, %v2892_v14  ;;  %v2923_v53 = vmul.f32 0.001, %v2891_v18 }
 0x1c6   :  { %2952 = vrot.lane.b32.xlu0 %v2920_v15, %s3431_s17 }
 0x1c7   :  { %2709 = vrot.lane.b32.xlu1 %v4737_v37, %s3430_s16 }
 0x1c9   :  { %v2820_v11 = vpop.permute.xlu0 %2819 }
 0x1ca   :  { %2956 = vrot.lane.b32.xlu0 %v2922_v28, %s3431_s17  ;;  %v2861_v8 = vsub.f32 %v4698_v54, %v2820_v11  ;;  %v2921_v54 = vmul.f32 0.001, %v2889_v27 }
 0x1cb   :  { %2713 = vrot.lane.b32.xlu1 %v4753_v20, %s3430_s16 }
 0x1cc   :  { %v2877_v61 = vsub.f32 0.0, %v2861_v8 }
 0x1ce   :  { %2960 = vrot.lane.b32.xlu0 %v2924_v1, %s3431_s17  ;;  %v2894_v29 = vmul.f32 0.03125, %v2877_v61 }
 0x1cf   :  { %2717 = vrot.lane.b32.xlu1 %v4768_v57, %s3430_s16 }
 0x1d0   :  { %v2926_v12 = vmul.f32 0.001, %v2894_v29  ;;  %v2818_v9 = vpop.permute.xlu1 %2817 }
 0x1d1   :  { %v2860_v34 = vsub.f32 %v4709_v35, %v2818_v9 }
 0x1d2   :  { %2964 = vrot.lane.b32.xlu0 %v2926_v12, %s3431_s17 }
 0x1d3   :  { %2721 = vrot.lane.b32.xlu1 %v4788_v16, %s3430_s16  ;;  %v2876_v55 = vsub.f32 0.0, %v2860_v34 }
 0x1d5   :  { %v2893_v49 = vmul.f32 0.03125, %v2876_v55 }
 0x1d7   :  { %2725 = vrot.lane.b32.xlu1 %v4794_v32, %s3430_s16  ;;  %v2925_v40 = vmul.f32 0.001, %v2893_v49 }
 0x1d8   :  { %v2824_v48 = vpop.permute.xlu0 %2823 }
 0x1d9   :  { %v2863_v39 = vsub.f32 %v4715_v51, %v2824_v48 }
 0x1db   :  { %2954 = vrot.lane.b32.xlu1 %v2921_v54, %s3431_s17  ;;  %v2879_v62 = vsub.f32 0.0, %v2863_v39 }
 0x1dd   :  { %v2896_v35 = vmul.f32 0.03125, %v2879_v62 }
 0x1df   :  { %2958 = vrot.lane.b32.xlu1 %v2923_v53, %s3431_s17  ;;  %v2928_v56 = vmul.f32 0.001, %v2896_v35 }
 0x1e1   :  { %2968 = vrot.lane.b32.xlu0 %v2928_v56, %s3431_s17 }
 0x1e3   :  { %2962 = vrot.lane.b32.xlu1 %v2925_v40, %s3431_s17 }
 0x1e4   :  { %v2822_v33 = vpop.permute.xlu1 %2821 }
 0x1e5   :  { %v2862_v60 = vsub.f32 %v4725_v3, %v2822_v33 }
 0x1e7   :  { %v2878_v21 = vsub.f32 0.0, %v2862_v60 }
 0x1e9   :  { %v2895_v59 = vmul.f32 0.03125, %v2878_v21 }
 0x1eb   :  { %v2927_v50 = vmul.f32 0.001, %v2895_v59 }
 0x1ed   :  { %v2828_v23 = vpop.permute.xlu0 %2827  ;;  %2966 = vrot.lane.b32.xlu1 %v2927_v50, %s3431_s17 }
 0x1ee   :  { %v2865_v5 = vsub.f32 %v4733_v10, %v2828_v23 }
 0x1f0   :  { %v2881_v51 = vsub.f32 0.0, %v2865_v5 }
 0x1f2   :  { %v2898_v44 = vmul.f32 0.03125, %v2881_v51 }
 0x1f4   :  { %v2930_v17 = vmul.f32 0.001, %v2898_v44 }
 0x1f6   :  { %2972 = vrot.lane.b32.xlu0 %v2930_v17, %s3431_s17 }
 0x1f8   :  { %v2826_v15 = vpop.permute.xlu1 %2825 }
 0x1f9   :  { %v2864_v45 = vsub.f32 %v4742_v52, %v2826_v15 }
 0x1fb   :  { %v2880_v7 = vsub.f32 0.0, %v2864_v45 }
 0x1fd   :  { %v2897_v28 = vmul.f32 0.03125, %v2880_v7 }
 0x1fe   :  { %v2832_v14 = vpop.permute.xlu0 %2831 }
 0x1ff   :  { %v2867_v3 = vsub.f32 %v4748_v25, %v2832_v14  ;;  %v2929_v4 = vmul.f32 0.001, %v2897_v28 }
 0x201   :  { %v2883_v1 = vsub.f32 0.0, %v2867_v3  ;;  %2970 = vrot.lane.b32.xlu1 %v2929_v4, %s3431_s17 }
 0x203   :  { %v2900_v10 = vmul.f32 0.03125, %v2883_v1 }
 0x205   :  { %v2932_v6 = vmul.f32 0.001, %v2900_v10 }
 0x207   :  { %2976 = vrot.lane.b32.xlu0 %v2932_v6, %s3431_s17 }
 0x20b   :  { %v2830_v11 = vpop.permute.xlu1 %2829 }
 0x20c   :  { %v2866_v8 = vsub.f32 %v4757_v13, %v2830_v11 }
 0x20e   :  { %v2882_v2 = vsub.f32 0.0, %v2866_v8 }
 0x210   :  { %v2899_v38 = vmul.f32 0.03125, %v2882_v2 }
 0x212   :  { %v2931_v61 = vmul.f32 0.001, %v2899_v38 }
 0x214   :  { %v2836_v52 = vpop.permute.xlu0 %2835  ;;  %2974 = vrot.lane.b32.xlu1 %v2931_v61, %s3431_s17 }
 0x215   :  { %v2869_v29 = vsub.f32 %v4765_v31, %v2836_v52 }
 0x217   :  { %v2885_v25 = vsub.f32 0.0, %v2869_v29 }
 0x218   :  { %v2696_v27 = vpop.permute.xlu0 %2695 }
 0x219   :  { %v2902_v24 = vmul.f32 0.03125, %v2885_v25  ;;  %v2743_v33 = vsub.f32 %v4683_v58, %v2696_v27 }
 0x21b   :  { %v2934_v12 = vmul.f32 0.001, %v2902_v24  ;;  %v2759_v59 = vsub.f32 0.0, %v2743_v33 }
 0x21c   :  { %v2700_v9 = vpop.permute.xlu0 %2699 }
 0x21d   :  { %2980 = vrot.lane.b32.xlu0 %v2934_v12, %s3431_s17  ;;  %v2745_v50 = vsub.f32 %v4689_v41, %v2700_v9  ;;  %v2904_v5 = vmul.f32 0.999, %v2759_v59 }
 0x21f   :  { %v2761_v51 = vsub.f32 0.0, %v2745_v50 }
 0x220   :  { %v2704_v34 = vpop.permute.xlu0 %2703 }
 0x221   :  { %v2747_v44 = vsub.f32 %v4696_v26, %v2704_v34  ;;  %v2906_v58 = vmul.f32 0.999, %v2761_v51 }
 0x222   :  { %v2834_v54 = vpop.permute.xlu1 %2833 }
 0x223   :  { %v2868_v18 = vsub.f32 %v4776_v22, %v2834_v54  ;;  %v2763_v7 = vsub.f32 0.0, %v2747_v44 }
 0x224   :  { %v2708_v13 = vpop.permute.xlu0 %2707 }
 0x225   :  { %v2884_v55 = vsub.f32 0.0, %v2868_v18  ;;  %v2749_v3 = vsub.f32 %v4713_v0, %v2708_v13  ;;  %v2908_v41 = vmul.f32 0.999, %v2763_v7 }
 0x227   :  { %v2901_v53 = vmul.f32 0.03125, %v2884_v55  ;;  %v2765_v6 = vsub.f32 0.0, %v2749_v3 }
 0x228   :  { %v2712_v49 = vpop.permute.xlu0 %2711 }
 0x229   :  { %v2838_v48 = vpop.permute.xlu1 %2837  ;;  %v2933_v39 = vmul.f32 0.001, %v2901_v53  ;;  %v2910_v2 = vmul.f32 0.999, %v2765_v6 }
 0x22a   :  { %v2870_v62 = vsub.f32 %v4781_v19, %v2838_v48 }
 0x22b   :  { %2978 = vrot.lane.b32.xlu1 %v2933_v39, %s3431_s17 }
 0x22c   :  { %v2886_v31 = vsub.f32 0.0, %v2870_v62  ;;  %v4855_v35 = vpop.permute.xlu0 %2715 }
 0x22d   :  { %v2698_v40 = vpop.permute.xlu1 %2697 }
 0x22e   :  { %v2903_v56 = vmul.f32 0.03125, %v2886_v31  ;;  %v2744_v26 = vsub.f32 %v4692_v43, %v2698_v40  ;;  %v2751_v43 = vsub.f32 %v4729_v46, %v2712_v49  ;;  %v2753_v49 = vsub.f32 %v4745_v42, %v4855_v35 }
 0x230   :  { %v2935_v60 = vmul.f32 0.001, %v2903_v56  ;;  %v4858_v22 = vpop.permute.xlu0 %2719  ;;  %v2760_v61 = vsub.f32 0.0, %v2744_v26  ;;  %v2767_v18 = vsub.f32 0.0, %v2751_v43 }
 0x231   :  { %v2702_v21 = vpop.permute.xlu1 %2701 }
 0x232   :  { %2982 = vrot.lane.b32.xlu1 %v2935_v60, %s3431_s17  ;;  %v2746_v52 = vsub.f32 %v4703_v63, %v2702_v21  ;;  %v2905_v25 = vmul.f32 0.999, %v2760_v61  ;;  %v2912_v53 = vmul.f32 0.999, %v2767_v18  ;;  %v2769_v60 = vsub.f32 0.0, %v2753_v49 }
 0x234   :  { %v4862_v19 = vpop.permute.xlu0 %2723  ;;  %v2762_v27 = vsub.f32 0.0, %v2746_v52  ;;  %v2914_v21 = vmul.f32 0.999, %v2769_v60 }
 0x235   :  { %v2706_v23 = vpop.permute.xlu1 %2705 }
 0x236   :  { %v2748_v24 = vsub.f32 %v4721_v36, %v2706_v23  ;;  %v2907_v34 = vmul.f32 0.999, %v2762_v27 }
 0x238   :  { %v2953_v15 = vpop.permute.xlu0 %2952  ;;  %v2764_v54 = vsub.f32 0.0, %v2748_v24 }
 0x239   :  { %v2710_v17 = vpop.permute.xlu1 %2709  ;;  %v3000_v45 = vadd.f32 %v2953_v15, %v2904_v5  ;;  %v2755_v5 = vsub.f32 %v4761_v47, %v4858_v22 }
 0x23a   :  { %v2909_v55 = vmul.f32 0.999, %v2764_v54  ;;  %v2750_v36 = vsub.f32 %v4737_v37, %v2710_v17 }
 0x23b   :  { %3032 = vrot.lane.b32.xlu0 %v3000_v45, %s3431_s17  ;;  %v2771_v42 = vsub.f32 0.0, %v2755_v5 }
 0x23c   :  { %v2957_v14 = vpop.permute.xlu0 %2956  ;;  %v2766_v46 = vsub.f32 0.0, %v2750_v36 }
 0x23d   :  { %v2714_v28 = vpop.permute.xlu1 %2713  ;;  %v3002_v4 = vadd.f32 %v2957_v14, %v2906_v58  ;;  %v2916_v17 = vmul.f32 0.999, %v2771_v42 }
 0x23e   :  { %v2911_v40 = vmul.f32 0.999, %v2766_v46  ;;  %v2752_v23 = vsub.f32 %v4753_v20, %v2714_v28  ;;  %v2757_v28 = vsub.f32 %v4774_v30, %v4862_v19 }
 0x23f   :  { %3036 = vrot.lane.b32.xlu0 %v3002_v4, %s3431_s17 }
 0x240   :  { %v2961_v10 = vpop.permute.xlu0 %2960  ;;  %v2768_v37 = vsub.f32 0.0, %v2752_v23  ;;  %v2773_v22 = vsub.f32 0.0, %v2757_v28 }
 0x241   :  { %v2718_v1 = vpop.permute.xlu1 %2717  ;;  %v3004_v11 = vadd.f32 %v2961_v10, %v2908_v41 }
 0x242   :  { %v2913_v51 = vmul.f32 0.999, %v2768_v37  ;;  %v2754_v58 = vsub.f32 %v4768_v57, %v2718_v1  ;;  %v2918_v3 = vmul.f32 0.999, %v2773_v22 }
 0x243   :  { %3040 = vrot.lane.b32.xlu0 %v3004_v11, %s3431_s17 }
 0x244   :  { %v2965_v38 = vpop.permute.xlu0 %2964  ;;  %v2770_v20 = vsub.f32 0.0, %v2754_v58 }
 0x245   :  { %v4870_v8 = vpop.permute.xlu1 %2721  ;;  %v3006_v0 = vadd.f32 %v2965_v38, %v2910_v2 }
 0x246   :  { %v2915_v7 = vmul.f32 0.999, %v2770_v20  ;;  %v2756_v57 = vsub.f32 %v4788_v16, %v4870_v8 }
 0x247   :  { %3044 = vrot.lane.b32.xlu0 %v3006_v0, %s3431_s17 }
 0x248   :  { %v2772_v1 = vsub.f32 0.0, %v2756_v57 }
 0x249   :  { %v4873_v29 = vpop.permute.xlu1 %2725 }
 0x24a   :  { %v2758_v10 = vsub.f32 %v4794_v32, %v4873_v29  ;;  %v2917_v6 = vmul.f32 0.999, %v2772_v1 }
 0x24c   :  { %v2774_v30 = vsub.f32 0.0, %v2758_v10 }
 0x24d   :  { %v2955_v12 = vpop.permute.xlu1 %2954 }
 0x24e   :  { %v3001_v9 = vadd.f32 %v2955_v12, %v2905_v25  ;;  %v2919_v26 = vmul.f32 0.999, %v2774_v30 }
 0x250   :  { %3034 = vrot.lane.b32.xlu1 %v3001_v9, %s3431_s17 }
 0x251   :  { %v2959_v13 = vpop.permute.xlu1 %2958 }
 0x252   :  { %v3003_v63 = vadd.f32 %v2959_v13, %v2907_v34 }
 0x253   :  { %v2969_v39 = vpop.permute.xlu0 %2968 }
 0x254   :  { %3038 = vrot.lane.b32.xlu1 %v3003_v63, %s3431_s17  ;;  %v3008_v31 = vadd.f32 %v2969_v39, %v2912_v53 }
 0x255   :  { %v2963_v48 = vpop.permute.xlu1 %2962 }
 0x256   :  { %v3005_v62 = vadd.f32 %v2963_v48, %v2909_v55  ;;  %3048 = vrot.lane.b32.xlu0 %v3008_v31, %s3431_s17 }
 0x258   :  { %3042 = vrot.lane.b32.xlu1 %v3005_v62, %s3431_s17 }
 0x25f   :  { %v2967_v56 = vpop.permute.xlu1 %2966 }
 0x260   :  { %v3007_v33 = vadd.f32 %v2967_v56, %v2911_v40 }
 0x262   :  { %3046 = vrot.lane.b32.xlu1 %v3007_v33, %s3431_s17 }
 0x268   :  { %v2973_v59 = vpop.permute.xlu0 %2972 }
 0x269   :  { %v3010_v50 = vadd.f32 %v2973_v59, %v2914_v21 }
 0x26b   :  { %3052 = vrot.lane.b32.xlu0 %v3010_v50, %s3431_s17 }
 0x273   :  { %v2971_v44 = vpop.permute.xlu1 %2970 }
 0x274   :  { %v3009_v35 = vadd.f32 %v2971_v44, %v2913_v51 }
 0x276   :  { %3050 = vrot.lane.b32.xlu1 %v3009_v35, %s3431_s17 }
 0x279   :  { %v2977_v15 = vpop.permute.xlu0 %2976 }
 0x27a   :  { %v3012_v45 = vadd.f32 %v2977_v15, %v2916_v17 }
 0x27c   :  { %3056 = vrot.lane.b32.xlu0 %v3012_v45, %s3431_s17 }
 0x286   :  { %v2975_v14 = vpop.permute.xlu1 %2974 }
 0x287   :  { %v3011_v47 = vadd.f32 %v2975_v14, %v2915_v7 }
 0x289   :  { %3054 = vrot.lane.b32.xlu1 %v3011_v47, %s3431_s17 }
 0x28f   :  { %v2981_v4 = vpop.permute.xlu0 %2980 }
 0x290   :  { %v3014_v41 = vadd.f32 %v2981_v4, %v2918_v3 }
 0x292   :  { %3060 = vrot.lane.b32.xlu0 %v3014_v41, %s3431_s17 }
 0x29d   :  { %v2979_v11 = vpop.permute.xlu1 %2978 }
 0x29e   :  { %v3013_v19 = vadd.f32 %v2979_v11, %v2917_v6 }
 0x2a0   :  { %3058 = vrot.lane.b32.xlu1 %v3013_v19, %s3431_s17 }
 0x2a4   :  { %v2983_v2 = vpop.permute.xlu1 %2982 }
 0x2a5   :  { %v3015_v38 = vadd.f32 %v2983_v2, %v2919_v26 }
 0x2a7   :  { %3062 = vrot.lane.b32.xlu1 %v3015_v38, %s3431_s17 }
 0x2ad   :  { %v3033_v61 = vpop.permute.xlu0 %3032 }
 0x2ae   :  { %3080 = vst.msk [vmem:[%s4969_s2] sm:$0xff] %vm2500_vm0, %v3033_v61 }
 0x2b1   :  { %v3037_v16 = vpop.permute.xlu0 %3036 }
 0x2b2   :  { %3082 = vst.msk [vmem:[%s4969_s2 + $0x10] sm:$0xff] %vm2500_vm0, %v3037_v16 }
 0x2b5   :  { %v3041_v32 = vpop.permute.xlu0 %3040 }
 0x2b6   :  { %3084 = vst.msk [vmem:[%s4969_s2 + $0x20] sm:$0xff] %vm2500_vm0, %v3041_v32 }
 0x2b9   :  { %v3045_v8 = vpop.permute.xlu0 %3044 }
 0x2ba   :  { %3086 = vst.msk [vmem:[%s4969_s2 + $0x30] sm:$0xff] %vm2500_vm0, %v3045_v8 }
 0x2c2   :  { %v3035_v52 = vpop.permute.xlu1 %3034 }
 0x2c3   :  { %3081 = vst.msk [vmem:[%s4969_s2 + $0x8] sm:$0xff] %vm2500_vm0, %v3035_v52 }
 0x2c6   :  { %v3039_v0 = vpop.permute.xlu1 %3038 }
 0x2c7   :  { %3083 = vst.msk [vmem:[%s4969_s2 + $0x18] sm:$0xff] %vm2500_vm0, %v3039_v0 }
 0x2c8   :  { %v3049_v25 = vpop.permute.xlu0 %3048 }
 0x2c9   :  { %3088 = vst.msk [vmem:[%s4969_s2 + $0x40] sm:$0xff] %vm2500_vm0, %v3049_v25 }
 0x2ca   :  { %v3043_v29 = vpop.permute.xlu1 %3042 }
 0x2cb   :  { %3085 = vst.msk [vmem:[%s4969_s2 + $0x28] sm:$0xff] %vm2500_vm0, %v3043_v29 }
 0x2d4   :  { %v3047_v27 = vpop.permute.xlu1 %3046 }
 0x2d5   :  { %3087 = vst.msk [vmem:[%s4969_s2 + $0x38] sm:$0xff] %vm2500_vm0, %v3047_v27 }
 0x2dd   :  { %v3053_v24 = vpop.permute.xlu0 %3052 }
 0x2de   :  { %3090 = vst.msk [vmem:[%s4969_s2 + $0x50] sm:$0xff] %vm2500_vm0, %v3053_v24 }
 0x2e8   :  { %v3051_v43 = vpop.permute.xlu1 %3050 }
 0x2e9   :  { %3089 = vst.msk [vmem:[%s4969_s2 + $0x48] sm:$0xff] %vm2500_vm0, %v3051_v43 }
 0x2ee   :  { %v3057_v12 = vpop.permute.xlu0 %3056 }
 0x2ef   :  { %3092 = vst.msk [vmem:[%s4969_s2 + $0x60] sm:$0xff] %vm2500_vm0, %v3057_v12 }
 0x2fb   :  { %v3055_v9 = vpop.permute.xlu1 %3054 }
 0x2fc   :  { %3091 = vst.msk [vmem:[%s4969_s2 + $0x58] sm:$0xff] %vm2500_vm0, %v3055_v9 }
 0x304   :  { %v3061_v34 = vpop.permute.xlu0 %3060 }
 0x305   :  { %3094 = vst.msk [vmem:[%s4969_s2 + $0x70] sm:$0xff] %vm2500_vm0, %v3061_v34 }
 0x312   :  { %v3059_v54 = vpop.permute.xlu1 %3058 }
 0x313   :  { %3093 = vst.msk [vmem:[%s4969_s2 + $0x68] sm:$0xff] %vm2500_vm0, %v3059_v54 }
 0x319   :  { %v3063_v18 = vpop.permute.xlu1 %3062 }
 0x31a   :  { %3095 = vst.msk [vmem:[%s4969_s2 + $0x78] sm:$0xff] %vm2500_vm0, %v3063_v18 }

</bundles_post_ra>
